<compile_context>
chip_gen: v7x
topology: tpu7x:2x2x1
jax: 0.10.0
libtpu: 0.0.40
codegen_flags: <defaults>
</compile_context>

<pallas_src>
import numpy as np

import jax
import jax.numpy as jnp
from jax import lax
from jax.experimental import pallas as pl
from jax.experimental.pallas import tpu as pltpu

KSIZE = 4
STRIDE = 2
BN_EPS = 1e-5
LRELU_SLOPE = 0.2
_LANES = 128


# ---------------------------------------------------------------------------
# Host/trace-time helpers
# ---------------------------------------------------------------------------
def _out_dim(d):
    return (d - KSIZE) // STRIDE + 1


def _full_spec(shape):
    zeros = (0,) * len(shape)
    return pl.BlockSpec(shape, lambda i: zeros)


def _sh_blocks(n, h_in, h_out):
    """Per-kh row-selection matrices S_kh: (n*h_out, n*h_in) 0/1 constants
    with S_kh[(b,ho), (b, 2*ho+kh)] = 1."""
    blocks = []
    for kh in range(KSIZE):
        s = np.zeros((n * h_out, n * h_in), np.float32)
        for b in range(n):
            for ho in range(h_out):
                s[b * h_out + ho, b * h_in + STRIDE * ho + kh] = 1.0
        blocks.append(s)
    return blocks


def _banded_weights(w_oihw, w_in, w_out):
    """Per-kh banded weight matrices M_kh: (w_in*cin, w_out*cout) with
    M_kh[(w,ci),(wo,co)] = W[co,ci,kh,w-2*wo] inside the kw band, else 0.
    Folds the stride-2 column subsampling + (kw, ci) contraction into a
    single matmul operand (built by XLA at trace time, outside the kernel)."""
    cout, cin, k, _ = w_oihw.shape
    e = np.zeros((w_in, w_out, k), np.float32)
    for wo in range(w_out):
        for kw in range(k):
            e[STRIDE * wo + kw, wo, kw] = 1.0
    e = jnp.asarray(e)
    w = w_oihw.astype(jnp.float32)
    out = []
    for kh in range(k):
        wk = w[:, :, kh, :]                              # (cout, cin, K)
        m = jnp.einsum("abk,cik->aibc", e, wk)           # (w_in, cin, w_out, cout)
        out.append(m.reshape(w_in * cin, w_out * cout))
    return out


def _pack_consts(blocks):
    """Pack small 2-D arrays into one (rows, 128) f32 operand.  Every block
    starts at an 8-aligned row so in-kernel reads are aligned static slices.
    Returns (consts, [(row_off, nrows, ncols), ...])."""
    padded, offsets, row = [], [], 0
    for b in blocks:
        b = jnp.asarray(b, jnp.float32)
        r, c = b.shape
        assert c <= _LANES, (r, c)
        pad_r = (-r) % 8
        padded.append(jnp.pad(b, ((0, pad_r), (0, _LANES - c))))
        offsets.append((row, r, c))
        row += r + pad_r
    return jnp.concatenate(padded, axis=0), offsets


# ---------------------------------------------------------------------------
# Fused Pallas kernel
# ---------------------------------------------------------------------------
def _make_kernel(n_batch, dims, offs):
    d1, d2, d3 = dims

    def blk(c_ref, o):
        r0, nr, nc = o
        return c_ref[r0:r0 + nr, 0:nc]          # static slice: free ref view

    def conv_layer(c_ref, act, sh_offs, m_offs):
        """act (n*h_in, w_in*c_in) -> conv output (n*h_out, w_out*c_out)."""
        acc = None
        for kh in range(KSIZE):
            sel = blk(c_ref, sh_offs[kh])       # (n*h_out, n*h_in)   0/1
            band = blk(c_ref, m_offs[kh])       # (w_in*c_in, w_out*c_out)
            rows = jnp.dot(sel, act, preferred_element_type=jnp.float32)
            part = jnp.dot(rows, band, preferred_element_type=jnp.float32)
            acc = part if acc is None else acc + part
        return acc

    def bn_lrelu(c_ref, y, d, r_off, rt_off, gl_off, bel_off):
        """Training-mode BatchNorm2d (biased batch var, two-pass) + LeakyReLU.
        y columns are (wo, co); R/RT are 0/1 maps (wo,co) <-> co."""
        _, _, _, hout, wout, cout = d
        r_mat = blk(c_ref, r_off)               # (wout*cout, cout)
        rt_mat = blk(c_ref, rt_off)             # (cout, wout*cout)
        gamma_l = blk(c_ref, gl_off)            # (1, wout*cout) pre-broadcast
        beta_l = blk(c_ref, bel_off)            # (1, wout*cout) pre-broadcast
        inv_n = 1.0 / float(n_batch * hout * wout)

        col_sum = jnp.sum(y, axis=0, keepdims=True)                 # (1, wout*cout)
        mean = jnp.dot(col_sum, r_mat,
                       preferred_element_type=jnp.float32) * inv_n  # (1, cout)
        mean_l = jnp.dot(mean, rt_mat, preferred_element_type=jnp.float32)
        centered = y - mean_l
        col_sq = jnp.sum(centered * centered, axis=0, keepdims=True)
        var = jnp.dot(col_sq, r_mat,
                      preferred_element_type=jnp.float32) * inv_n   # (1, cout)
        var_l = jnp.dot(var, rt_mat, preferred_element_type=jnp.float32)
        scale_l = gamma_l * lax.rsqrt(var_l + BN_EPS)
        z = centered * scale_l + beta_l
        return jnp.maximum(z, LRELU_SLOPE * z)                      # LeakyReLU

    def kernel(x_ref, c_ref, o_ref):
        a0 = x_ref[...]                                             # (N*H0, W0*C0)
        # Blocks 1 & 2: conv (bias dropped -- cancelled exactly by the BN
        # batch-mean subtraction) + BN + LeakyReLU.  Intermediates stay in vregs.
        y1 = bn_lrelu(c_ref,
                      conv_layer(c_ref, a0, offs["sh1"], offs["m1"]),
                      d1, offs["r1"], offs["rt1"], offs["g1l"], offs["be1l"])
        y2 = bn_lrelu(c_ref,
                      conv_layer(c_ref, y1, offs["sh2"], offs["m2"]),
                      d2, offs["r2"], offs["rt2"], offs["g2l"], offs["be2l"])
        # Block 3: final conv + bias, single dense slab store.
        y3 = conv_layer(c_ref, y2, offs["sh3"], offs["m3"])
        o_ref[...] = y3 + blk(c_ref, offs["b3l"])

    return kernel


# ---------------------------------------------------------------------------
# Wrapper: constant/operand packing + single pallas_call
# ---------------------------------------------------------------------------
@jax.jit
def discriminator_forward(params, image_nchw):
    """Equivalent of Discriminator.forward (training-mode BN); input is NCHW."""
    n, c0, h0, w0 = image_nchw.shape
    c1 = params["w1"].shape[0]
    c2 = params["w2"].shape[0]
    c3 = params["w3"].shape[0]
    h1, w1 = _out_dim(h0), _out_dim(w0)
    h2, w2 = _out_dim(h1), _out_dim(w1)
    h3, w3 = _out_dim(h2), _out_dim(w2)
    dims = ((h0, w0, c0, h1, w1, c1),
            (h1, w1, c1, h2, w2, c2),
            (h2, w2, c2, h3, w3, c3))

    # Lane-dense activation layout used everywhere: rows (n, h), lanes (w, c).
    x2d = jnp.transpose(image_nchw, (0, 2, 3, 1)).astype(jnp.float32)
    x2d = x2d.reshape(n * h0, w0 * c0)

    named = []
    # Shape-only 0/1 row-selection matrices (numpy, trace-time constants).
    named += [("sh1", s) for s in _sh_blocks(n, h0, h1)]
    named += [("sh2", s) for s in _sh_blocks(n, h1, h2)]
    named += [("sh3", s) for s in _sh_blocks(n, h2, h3)]
    # Weight-dependent banded matrices (assembled by XLA outside the kernel).
    named += [("m1", m) for m in _banded_weights(params["w1"], w0, w1)]
    named += [("m2", m) for m in _banded_weights(params["w2"], w1, w2)]
    named += [("m3", m) for m in _banded_weights(params["w3"], w2, w3)]
    # BN lane<->channel reduction maps + pre-broadcast per-channel params.
    named += [
        ("r1", np.tile(np.eye(c1, dtype=np.float32), (w1, 1))),
        ("rt1", np.tile(np.eye(c1, dtype=np.float32), (1, w1))),
        ("r2", np.tile(np.eye(c2, dtype=np.float32), (w2, 1))),
        ("rt2", np.tile(np.eye(c2, dtype=np.float32), (1, w2))),
        ("g1l", jnp.tile(params["g1"].reshape(1, c1), (1, w1))),
        ("be1l", jnp.tile(params["be1"].reshape(1, c1), (1, w1))),
        ("g2l", jnp.tile(params["g2"].reshape(1, c2), (1, w2))),
        ("be2l", jnp.tile(params["be2"].reshape(1, c2), (1, w2))),
        ("b3l", jnp.tile(params["b3"].reshape(1, c3), (1, w3))),
    ]
    # NOTE: b1/b2 (conv biases feeding training-mode BatchNorm) are cancelled
    # exactly by the batch-mean subtraction, so they are intentionally unused.
    consts, offset_list = _pack_consts([arr for _, arr in named])
    offs = {}
    for (name, _), off in zip(named, offset_list):
        offs.setdefault(name, []).append(off)
    for key in ("r1", "rt1", "r2", "rt2", "g1l", "be1l", "g2l", "be2l", "b3l"):
        offs[key] = offs[key][0]

    out2d = pl.pallas_call(
        _make_kernel(n, dims, offs),
        out_shape=jax.ShapeDtypeStruct((n * h3, w3 * c3), jnp.float32),
        grid=(1,),
        in_specs=[_full_spec(x2d.shape), _full_spec(consts.shape)],
        out_specs=_full_spec((n * h3, w3 * c3)),
        compiler_params=pltpu.CompilerParams(
            dimension_semantics=("arbitrary",),
            vmem_limit_bytes=32 * 1024 * 1024,
        ),
    )(x2d, consts)

    # Back to torch's NCHW flatten order: disc_pred.view(N, -1).
    out = out2d.reshape(n, h3, w3, c3).transpose(0, 3, 1, 2)
    return out.reshape(n, -1)


# ---------------------------------------------------------------------------
# Pure-JAX reference (correctness check; includes the redundant conv biases)
# ---------------------------------------------------------------------------
def reference_forward(params, image_nchw):
    def conv(x, w, b):
        y = lax.conv_general_dilated(
            x, w, (STRIDE, STRIDE), "VALID",
            dimension_numbers=("NCHW", "OIHW", "NCHW"))
        return y + b[None, :, None, None]

    def bn_lrelu(x, g, be):
        mean = jnp.mean(x, axis=(0, 2, 3), keepdims=True)
        var = jnp.mean(jnp.square(x - mean), axis=(0, 2, 3), keepdims=True)
        xhat = (x - mean) / jnp.sqrt(var + BN_EPS)
        z = g[None, :, None, None] * xhat + be[None, :, None, None]
        return jnp.where(z >= 0, z, LRELU_SLOPE * z)

    x = bn_lrelu(conv(image_nchw, params["w1"], params["b1"]),
                 params["g1"], params["be1"])
    x = bn_lrelu(conv(x, params["w2"], params["b2"]),
                 params["g2"], params["be2"])
    x = conv(x, params["w3"], params["b3"])
    return x.reshape(x.shape[0], -1)


# ---------------------------------------------------------------------------
# Deterministic parameter init + driver
# ---------------------------------------------------------------------------
def init_params(key, im_chan=1, hidden_dim=8):
    ks = jax.random.split(key, 9)
    h, h2 = hidden_dim, hidden_dim * 2
    return {
        "w1": 0.05 * jax.random.normal(ks[0], (h, im_chan, 4, 4), jnp.float32),
        "b1": 0.05 * jax.random.normal(ks[1], (h,), jnp.float32),
        "g1": 1.0 + 0.1 * jax.random.normal(ks[2], (h,), jnp.float32),
        "be1": 0.1 * jax.random.normal(ks[3], (h,), jnp.float32),
        "w2": 0.05 * jax.random.normal(ks[4], (h2, h, 4, 4), jnp.float32),
        "b2": 0.05 * jax.random.normal(ks[5], (h2,), jnp.float32),
        "g2": 1.0 + 0.1 * jax.random.normal(ks[6], (h2,), jnp.float32),
        "be2": 0.1 * jax.random.normal(ks[7], (h2,), jnp.float32),
        "w3": 0.05 * jax.random.normal(ks[8], (1, h2, 4, 4), jnp.float32),
        "b3": jnp.zeros((1,), jnp.float32),
    }


if __name__ == "__main__":
    key = jax.random.PRNGKey(0)
    k_param, k_img = jax.random.split(key)

    # MNIST-like 28x28 single channel, small hidden_dim for speed.
    # Spatial chain: 28 -> 13 -> 5 -> 1.
    N, C, H, W = 2, 1, 28, 28
    params = init_params(k_param, im_chan=C, hidden_dim=8)
    image = jax.random.normal(k_img, (N, C, H, W), jnp.float32)

    out = jax.block_until_ready(discriminator_forward(params, image))
    assert out.shape == (N, 1), out.shape

    ref = jax.block_until_ready(reference_forward(params, image))
    assert jnp.allclose(out, ref, rtol=1e-3, atol=1e-3), (out, ref)

    print("KERNEL_OK")
</pallas_src>

<mosaic_0001>
module attributes {stable_mosaic.version = 11 : i64} {
  func.func @kernel(%arg0: i32, %arg1: memref<56x28xf32, #tpu.memory_space<vmem>>, %arg2: memref<1336x128xf32, #tpu.memory_space<vmem>>, %arg3: memref<2x1xf32, #tpu.memory_space<vmem>>) attributes {dimension_semantics = [#tpu.dimension_semantics<arbitrary>], iteration_bounds = array<i64: 1>, scalar_prefetch = 0 : i64, scratch_operands = 0 : i64, tpu.core_type = #tpu.core_type<tc>, window_params = [{pipeline_mode = #tpu.pipeline_mode<synchronous>, transform_indices = @transform_0, window_bounds = array<i64: 56, 28>}, {pipeline_mode = #tpu.pipeline_mode<synchronous>, transform_indices = @transform_1, window_bounds = array<i64: 1336, 128>}, {pipeline_mode = #tpu.pipeline_mode<synchronous>, transform_indices = @transform_2, window_bounds = array<i64: 2, 1>}]} {
    %c0 = arith.constant 0 : index
    %c0_0 = arith.constant 0 : index
    %0 = vector.load %arg1[%c0, %c0_0] : memref<56x28xf32, #tpu.memory_space<vmem>>, vector<56x28xf32>
    %c0_1 = arith.constant 0 : index
    %c0_2 = arith.constant 0 : index
    %1 = vector.load %arg2[%c0_1, %c0_2] : memref<1336x128xf32, #tpu.memory_space<vmem>>, vector<26x56xf32>
    %c224 = arith.constant 224 : index
    %c0_3 = arith.constant 0 : index
    %2 = vector.load %arg2[%c224, %c0_3] : memref<1336x128xf32, #tpu.memory_space<vmem>>, vector<28x104xf32>
    %cst = arith.constant dense<0.000000e+00> : vector<26x28xf32>
    %3 = tpu.matmul %1, %0, %cst {dimension_numbers = #tpu.dot_dimension_numbers<[1], [0], [0], [1], [0, 0, 1, 1], [], []>} : vector<26x56xf32>, vector<56x28xf32>, vector<26x28xf32> -> vector<26x28xf32>
    %cst_4 = arith.constant dense<0.000000e+00> : vector<26x104xf32>
    %4 = tpu.matmul %3, %2, %cst_4 {dimension_numbers = #tpu.dot_dimension_numbers<[1], [0], [0], [1], [0, 0, 1, 1], [], []>} : vector<26x28xf32>, vector<28x104xf32>, vector<26x104xf32> -> vector<26x104xf32>
    %c32 = arith.constant 32 : index
    %c0_5 = arith.constant 0 : index
    %5 = vector.load %arg2[%c32, %c0_5] : memref<1336x128xf32, #tpu.memory_space<vmem>>, vector<26x56xf32>
    %c256 = arith.constant 256 : index
    %c0_6 = arith.constant 0 : index
    %6 = vector.load %arg2[%c256, %c0_6] : memref<1336x128xf32, #tpu.memory_space<vmem>>, vector<28x104xf32>
    %cst_7 = arith.constant dense<0.000000e+00> : vector<26x28xf32>
    %7 = tpu.matmul %5, %0, %cst_7 {dimension_numbers = #tpu.dot_dimension_numbers<[1], [0], [0], [1], [0, 0, 1, 1], [], []>} : vector<26x56xf32>, vector<56x28xf32>, vector<26x28xf32> -> vector<26x28xf32>
    %cst_8 = arith.constant dense<0.000000e+00> : vector<26x104xf32>
    %8 = tpu.matmul %7, %6, %cst_8 {dimension_numbers = #tpu.dot_dimension_numbers<[1], [0], [0], [1], [0, 0, 1, 1], [], []>} : vector<26x28xf32>, vector<28x104xf32>, vector<26x104xf32> -> vector<26x104xf32>
    %9 = arith.addf %4, %8 : vector<26x104xf32>
    %c64 = arith.constant 64 : index
    %c0_9 = arith.constant 0 : index
    %10 = vector.load %arg2[%c64, %c0_9] : memref<1336x128xf32, #tpu.memory_space<vmem>>, vector<26x56xf32>
    %c288 = arith.constant 288 : index
    %c0_10 = arith.constant 0 : index
    %11 = vector.load %arg2[%c288, %c0_10] : memref<1336x128xf32, #tpu.memory_space<vmem>>, vector<28x104xf32>
    %cst_11 = arith.constant dense<0.000000e+00> : vector<26x28xf32>
    %12 = tpu.matmul %10, %0, %cst_11 {dimension_numbers = #tpu.dot_dimension_numbers<[1], [0], [0], [1], [0, 0, 1, 1], [], []>} : vector<26x56xf32>, vector<56x28xf32>, vector<26x28xf32> -> vector<26x28xf32>
    %cst_12 = arith.constant dense<0.000000e+00> : vector<26x104xf32>
    %13 = tpu.matmul %12, %11, %cst_12 {dimension_numbers = #tpu.dot_dimension_numbers<[1], [0], [0], [1], [0, 0, 1, 1], [], []>} : vector<26x28xf32>, vector<28x104xf32>, vector<26x104xf32> -> vector<26x104xf32>
    %14 = arith.addf %9, %13 : vector<26x104xf32>
    %c96 = arith.constant 96 : index
    %c0_13 = arith.constant 0 : index
    %15 = vector.load %arg2[%c96, %c0_13] : memref<1336x128xf32, #tpu.memory_space<vmem>>, vector<26x56xf32>
    %c320 = arith.constant 320 : index
    %c0_14 = arith.constant 0 : index
    %16 = vector.load %arg2[%c320, %c0_14] : memref<1336x128xf32, #tpu.memory_space<vmem>>, vector<28x104xf32>
    %cst_15 = arith.constant dense<0.000000e+00> : vector<26x28xf32>
    %17 = tpu.matmul %15, %0, %cst_15 {dimension_numbers = #tpu.dot_dimension_numbers<[1], [0], [0], [1], [0, 0, 1, 1], [], []>} : vector<26x56xf32>, vector<56x28xf32>, vector<26x28xf32> -> vector<26x28xf32>
    %cst_16 = arith.constant dense<0.000000e+00> : vector<26x104xf32>
    %18 = tpu.matmul %17, %16, %cst_16 {dimension_numbers = #tpu.dot_dimension_numbers<[1], [0], [0], [1], [0, 0, 1, 1], [], []>} : vector<26x28xf32>, vector<28x104xf32>, vector<26x104xf32> -> vector<26x104xf32>
    %19 = arith.addf %14, %18 : vector<26x104xf32>
    %c1088 = arith.constant 1088 : index
    %c0_17 = arith.constant 0 : index
    %20 = vector.load %arg2[%c1088, %c0_17] : memref<1336x128xf32, #tpu.memory_space<vmem>>, vector<104x8xf32>
    %c1192 = arith.constant 1192 : index
    %c0_18 = arith.constant 0 : index
    %21 = vector.load %arg2[%c1192, %c0_18] : memref<1336x128xf32, #tpu.memory_space<vmem>>, vector<8x104xf32>
    %c1296 = arith.constant 1296 : index
    %c0_19 = arith.constant 0 : index
    %22 = vector.load %arg2[%c1296, %c0_19] : memref<1336x128xf32, #tpu.memory_space<vmem>>, vector<1x104xf32>
    %c1304 = arith.constant 1304 : index
    %c0_20 = arith.constant 0 : index
    %23 = vector.load %arg2[%c1304, %c0_20] : memref<1336x128xf32, #tpu.memory_space<vmem>>, vector<1x104xf32>
    %cst_21 = arith.constant dense<0.000000e+00> : vector<104xf32>
    %24 = vector.multi_reduction <add>, %19, %cst_21 [0] : vector<26x104xf32> to vector<104xf32>
    %25 = vector.shape_cast %24 : vector<104xf32> to vector<1x104xf32>
    %cst_22 = arith.constant dense<0.000000e+00> : vector<1x8xf32>
    %26 = tpu.matmul %25, %20, %cst_22 {dimension_numbers = #tpu.dot_dimension_numbers<[1], [0], [0], [1], [0, 0, 1, 1], [], []>} : vector<1x104xf32>, vector<104x8xf32>, vector<1x8xf32> -> vector<1x8xf32>
    %cst_23 = arith.constant 2.958580e-03 : f32
    %27 = vector.broadcast %cst_23 : f32 to vector<1x8xf32>
    %28 = arith.mulf %26, %27 : vector<1x8xf32>
    %cst_24 = arith.constant dense<0.000000e+00> : vector<1x104xf32>
    %29 = tpu.matmul %28, %21, %cst_24 {dimension_numbers = #tpu.dot_dimension_numbers<[1], [0], [0], [1], [0, 0, 1, 1], [], []>} : vector<1x8xf32>, vector<8x104xf32>, vector<1x104xf32> -> vector<1x104xf32>
    %30 = vector.broadcast %29 : vector<1x104xf32> to vector<26x104xf32>
    %31 = arith.subf %19, %30 : vector<26x104xf32>
    %32 = arith.mulf %31, %31 : vector<26x104xf32>
    %cst_25 = arith.constant dense<0.000000e+00> : vector<104xf32>
    %33 = vector.multi_reduction <add>, %32, %cst_25 [0] : vector<26x104xf32> to vector<104xf32>
    %34 = vector.shape_cast %33 : vector<104xf32> to vector<1x104xf32>
    %cst_26 = arith.constant dense<0.000000e+00> : vector<1x8xf32>
    %35 = tpu.matmul %34, %20, %cst_26 {dimension_numbers = #tpu.dot_dimension_numbers<[1], [0], [0], [1], [0, 0, 1, 1], [], []>} : vector<1x104xf32>, vector<104x8xf32>, vector<1x8xf32> -> vector<1x8xf32>
    %cst_27 = arith.constant 2.958580e-03 : f32
    %36 = vector.broadcast %cst_27 : f32 to vector<1x8xf32>
    %37 = arith.mulf %35, %36 : vector<1x8xf32>
    %cst_28 = arith.constant dense<0.000000e+00> : vector<1x104xf32>
    %38 = tpu.matmul %37, %21, %cst_28 {dimension_numbers = #tpu.dot_dimension_numbers<[1], [0], [0], [1], [0, 0, 1, 1], [], []>} : vector<1x8xf32>, vector<8x104xf32>, vector<1x104xf32> -> vector<1x104xf32>
    %cst_29 = arith.constant 9.99999974E-6 : f32
    %39 = vector.broadcast %cst_29 : f32 to vector<1x104xf32>
    %40 = arith.addf %38, %39 : vector<1x104xf32>
    %41 = math.rsqrt %40 : vector<1x104xf32>
    %42 = arith.mulf %22, %41 : vector<1x104xf32>
    %43 = vector.broadcast %42 : vector<1x104xf32> to vector<26x104xf32>
    %44 = arith.mulf %31, %43 : vector<26x104xf32>
    %45 = vector.broadcast %23 : vector<1x104xf32> to vector<26x104xf32>
    %46 = arith.addf %44, %45 : vector<26x104xf32>
    %cst_30 = arith.constant 2.000000e-01 : f32
    %47 = vector.broadcast %cst_30 : f32 to vector<26x104xf32>
    %48 = arith.mulf %47, %46 : vector<26x104xf32>
    %49 = arith.maximumf %46, %48 : vector<26x104xf32>
    %c128 = arith.constant 128 : index
    %c0_31 = arith.constant 0 : index
    %50 = vector.load %arg2[%c128, %c0_31] : memref<1336x128xf32, #tpu.memory_space<vmem>>, vector<10x26xf32>
    %c352 = arith.constant 352 : index
    %c0_32 = arith.constant 0 : index
    %51 = vector.load %arg2[%c352, %c0_32] : memref<1336x128xf32, #tpu.memory_space<vmem>>, vector<104x80xf32>
    %cst_33 = arith.constant dense<0.000000e+00> : vector<10x104xf32>
    %52 = tpu.matmul %50, %49, %cst_33 {dimension_numbers = #tpu.dot_dimension_numbers<[1], [0], [0], [1], [0, 0, 1, 1], [], []>} : vector<10x26xf32>, vector<26x104xf32>, vector<10x104xf32> -> vector<10x104xf32>
    %cst_34 = arith.constant dense<0.000000e+00> : vector<10x80xf32>
    %53 = tpu.matmul %52, %51, %cst_34 {dimension_numbers = #tpu.dot_dimension_numbers<[1], [0], [0], [1], [0, 0, 1, 1], [], []>} : vector<10x104xf32>, vector<104x80xf32>, vector<10x80xf32> -> vector<10x80xf32>
    %c144 = arith.constant 144 : index
    %c0_35 = arith.constant 0 : index
    %54 = vector.load %arg2[%c144, %c0_35] : memref<1336x128xf32, #tpu.memory_space<vmem>>, vector<10x26xf32>
    %c456 = arith.constant 456 : index
    %c0_36 = arith.constant 0 : index
    %55 = vector.load %arg2[%c456, %c0_36] : memref<1336x128xf32, #tpu.memory_space<vmem>>, vector<104x80xf32>
    %cst_37 = arith.constant dense<0.000000e+00> : vector<10x104xf32>
    %56 = tpu.matmul %54, %49, %cst_37 {dimension_numbers = #tpu.dot_dimension_numbers<[1], [0], [0], [1], [0, 0, 1, 1], [], []>} : vector<10x26xf32>, vector<26x104xf32>, vector<10x104xf32> -> vector<10x104xf32>
    %cst_38 = arith.constant dense<0.000000e+00> : vector<10x80xf32>
    %57 = tpu.matmul %56, %55, %cst_38 {dimension_numbers = #tpu.dot_dimension_numbers<[1], [0], [0], [1], [0, 0, 1, 1], [], []>} : vector<10x104xf32>, vector<104x80xf32>, vector<10x80xf32> -> vector<10x80xf32>
    %58 = arith.addf %53, %57 : vector<10x80xf32>
    %c160 = arith.constant 160 : index
    %c0_39 = arith.constant 0 : index
    %59 = vector.load %arg2[%c160, %c0_39] : memref<1336x128xf32, #tpu.memory_space<vmem>>, vector<10x26xf32>
    %c560 = arith.constant 560 : index
    %c0_40 = arith.constant 0 : index
    %60 = vector.load %arg2[%c560, %c0_40] : memref<1336x128xf32, #tpu.memory_space<vmem>>, vector<104x80xf32>
    %cst_41 = arith.constant dense<0.000000e+00> : vector<10x104xf32>
    %61 = tpu.matmul %59, %49, %cst_41 {dimension_numbers = #tpu.dot_dimension_numbers<[1], [0], [0], [1], [0, 0, 1, 1], [], []>} : vector<10x26xf32>, vector<26x104xf32>, vector<10x104xf32> -> vector<10x104xf32>
    %cst_42 = arith.constant dense<0.000000e+00> : vector<10x80xf32>
    %62 = tpu.matmul %61, %60, %cst_42 {dimension_numbers = #tpu.dot_dimension_numbers<[1], [0], [0], [1], [0, 0, 1, 1], [], []>} : vector<10x104xf32>, vector<104x80xf32>, vector<10x80xf32> -> vector<10x80xf32>
    %63 = arith.addf %58, %62 : vector<10x80xf32>
    %c176 = arith.constant 176 : index
    %c0_43 = arith.constant 0 : index
    %64 = vector.load %arg2[%c176, %c0_43] : memref<1336x128xf32, #tpu.memory_space<vmem>>, vector<10x26xf32>
    %c664 = arith.constant 664 : index
    %c0_44 = arith.constant 0 : index
    %65 = vector.load %arg2[%c664, %c0_44] : memref<1336x128xf32, #tpu.memory_space<vmem>>, vector<104x80xf32>
    %cst_45 = arith.constant dense<0.000000e+00> : vector<10x104xf32>
    %66 = tpu.matmul %64, %49, %cst_45 {dimension_numbers = #tpu.dot_dimension_numbers<[1], [0], [0], [1], [0, 0, 1, 1], [], []>} : vector<10x26xf32>, vector<26x104xf32>, vector<10x104xf32> -> vector<10x104xf32>
    %cst_46 = arith.constant dense<0.000000e+00> : vector<10x80xf32>
    %67 = tpu.matmul %66, %65, %cst_46 {dimension_numbers = #tpu.dot_dimension_numbers<[1], [0], [0], [1], [0, 0, 1, 1], [], []>} : vector<10x104xf32>, vector<104x80xf32>, vector<10x80xf32> -> vector<10x80xf32>
    %68 = arith.addf %63, %67 : vector<10x80xf32>
    %c1200 = arith.constant 1200 : index
    %c0_47 = arith.constant 0 : index
    %69 = vector.load %arg2[%c1200, %c0_47] : memref<1336x128xf32, #tpu.memory_space<vmem>>, vector<80x16xf32>
    %c1280 = arith.constant 1280 : index
    %c0_48 = arith.constant 0 : index
    %70 = vector.load %arg2[%c1280, %c0_48] : memref<1336x128xf32, #tpu.memory_space<vmem>>, vector<16x80xf32>
    %c1312 = arith.constant 1312 : index
    %c0_49 = arith.constant 0 : index
    %71 = vector.load %arg2[%c1312, %c0_49] : memref<1336x128xf32, #tpu.memory_space<vmem>>, vector<1x80xf32>
    %c1320 = arith.constant 1320 : index
    %c0_50 = arith.constant 0 : index
    %72 = vector.load %arg2[%c1320, %c0_50] : memref<1336x128xf32, #tpu.memory_space<vmem>>, vector<1x80xf32>
    %cst_51 = arith.constant dense<0.000000e+00> : vector<80xf32>
    %73 = vector.multi_reduction <add>, %68, %cst_51 [0] : vector<10x80xf32> to vector<80xf32>
    %74 = vector.shape_cast %73 : vector<80xf32> to vector<1x80xf32>
    %cst_52 = arith.constant dense<0.000000e+00> : vector<1x16xf32>
    %75 = tpu.matmul %74, %69, %cst_52 {dimension_numbers = #tpu.dot_dimension_numbers<[1], [0], [0], [1], [0, 0, 1, 1], [], []>} : vector<1x80xf32>, vector<80x16xf32>, vector<1x16xf32> -> vector<1x16xf32>
    %cst_53 = arith.constant 2.000000e-02 : f32
    %76 = vector.broadcast %cst_53 : f32 to vector<1x16xf32>
    %77 = arith.mulf %75, %76 : vector<1x16xf32>
    %cst_54 = arith.constant dense<0.000000e+00> : vector<1x80xf32>
    %78 = tpu.matmul %77, %70, %cst_54 {dimension_numbers = #tpu.dot_dimension_numbers<[1], [0], [0], [1], [0, 0, 1, 1], [], []>} : vector<1x16xf32>, vector<16x80xf32>, vector<1x80xf32> -> vector<1x80xf32>
    %79 = vector.broadcast %78 : vector<1x80xf32> to vector<10x80xf32>
    %80 = arith.subf %68, %79 : vector<10x80xf32>
    %81 = arith.mulf %80, %80 : vector<10x80xf32>
    %cst_55 = arith.constant dense<0.000000e+00> : vector<80xf32>
    %82 = vector.multi_reduction <add>, %81, %cst_55 [0] : vector<10x80xf32> to vector<80xf32>
    %83 = vector.shape_cast %82 : vector<80xf32> to vector<1x80xf32>
    %cst_56 = arith.constant dense<0.000000e+00> : vector<1x16xf32>
    %84 = tpu.matmul %83, %69, %cst_56 {dimension_numbers = #tpu.dot_dimension_numbers<[1], [0], [0], [1], [0, 0, 1, 1], [], []>} : vector<1x80xf32>, vector<80x16xf32>, vector<1x16xf32> -> vector<1x16xf32>
    %cst_57 = arith.constant 2.000000e-02 : f32
    %85 = vector.broadcast %cst_57 : f32 to vector<1x16xf32>
    %86 = arith.mulf %84, %85 : vector<1x16xf32>
    %cst_58 = arith.constant dense<0.000000e+00> : vector<1x80xf32>
    %87 = tpu.matmul %86, %70, %cst_58 {dimension_numbers = #tpu.dot_dimension_numbers<[1], [0], [0], [1], [0, 0, 1, 1], [], []>} : vector<1x16xf32>, vector<16x80xf32>, vector<1x80xf32> -> vector<1x80xf32>
    %cst_59 = arith.constant 9.99999974E-6 : f32
    %88 = vector.broadcast %cst_59 : f32 to vector<1x80xf32>
    %89 = arith.addf %87, %88 : vector<1x80xf32>
    %90 = math.rsqrt %89 : vector<1x80xf32>
    %91 = arith.mulf %71, %90 : vector<1x80xf32>
    %92 = vector.broadcast %91 : vector<1x80xf32> to vector<10x80xf32>
    %93 = arith.mulf %80, %92 : vector<10x80xf32>
    %94 = vector.broadcast %72 : vector<1x80xf32> to vector<10x80xf32>
    %95 = arith.addf %93, %94 : vector<10x80xf32>
    %cst_60 = arith.constant 2.000000e-01 : f32
    %96 = vector.broadcast %cst_60 : f32 to vector<10x80xf32>
    %97 = arith.mulf %96, %95 : vector<10x80xf32>
    %98 = arith.maximumf %95, %97 : vector<10x80xf32>
    %c192 = arith.constant 192 : index
    %c0_61 = arith.constant 0 : index
    %99 = vector.load %arg2[%c192, %c0_61] : memref<1336x128xf32, #tpu.memory_space<vmem>>, vector<2x10xf32>
    %c768 = arith.constant 768 : index
    %c0_62 = arith.constant 0 : index
    %100 = vector.load %arg2[%c768, %c0_62] : memref<1336x128xf32, #tpu.memory_space<vmem>>, vector<80x1xf32>
    %cst_63 = arith.constant dense<0.000000e+00> : vector<2x80xf32>
    %101 = tpu.matmul %99, %98, %cst_63 {dimension_numbers = #tpu.dot_dimension_numbers<[1], [0], [0], [1], [0, 0, 1, 1], [], []>} : vector<2x10xf32>, vector<10x80xf32>, vector<2x80xf32> -> vector<2x80xf32>
    %cst_64 = arith.constant dense<0.000000e+00> : vector<2x1xf32>
    %102 = tpu.matmul %101, %100, %cst_64 {dimension_numbers = #tpu.dot_dimension_numbers<[1], [0], [0], [1], [0, 0, 1, 1], [], []>} : vector<2x80xf32>, vector<80x1xf32>, vector<2x1xf32> -> vector<2x1xf32>
    %c200 = arith.constant 200 : index
    %c0_65 = arith.constant 0 : index
    %103 = vector.load %arg2[%c200, %c0_65] : memref<1336x128xf32, #tpu.memory_space<vmem>>, vector<2x10xf32>
    %c848 = arith.constant 848 : index
    %c0_66 = arith.constant 0 : index
    %104 = vector.load %arg2[%c848, %c0_66] : memref<1336x128xf32, #tpu.memory_space<vmem>>, vector<80x1xf32>
    %cst_67 = arith.constant dense<0.000000e+00> : vector<2x80xf32>
    %105 = tpu.matmul %103, %98, %cst_67 {dimension_numbers = #tpu.dot_dimension_numbers<[1], [0], [0], [1], [0, 0, 1, 1], [], []>} : vector<2x10xf32>, vector<10x80xf32>, vector<2x80xf32> -> vector<2x80xf32>
    %cst_68 = arith.constant dense<0.000000e+00> : vector<2x1xf32>
    %106 = tpu.matmul %105, %104, %cst_68 {dimension_numbers = #tpu.dot_dimension_numbers<[1], [0], [0], [1], [0, 0, 1, 1], [], []>} : vector<2x80xf32>, vector<80x1xf32>, vector<2x1xf32> -> vector<2x1xf32>
    %107 = arith.addf %102, %106 : vector<2x1xf32>
    %c208 = arith.constant 208 : index
    %c0_69 = arith.constant 0 : index
    %108 = vector.load %arg2[%c208, %c0_69] : memref<1336x128xf32, #tpu.memory_space<vmem>>, vector<2x10xf32>
    %c928 = arith.constant 928 : index
    %c0_70 = arith.constant 0 : index
    %109 = vector.load %arg2[%c928, %c0_70] : memref<1336x128xf32, #tpu.memory_space<vmem>>, vector<80x1xf32>
    %cst_71 = arith.constant dense<0.000000e+00> : vector<2x80xf32>
    %110 = tpu.matmul %108, %98, %cst_71 {dimension_numbers = #tpu.dot_dimension_numbers<[1], [0], [0], [1], [0, 0, 1, 1], [], []>} : vector<2x10xf32>, vector<10x80xf32>, vector<2x80xf32> -> vector<2x80xf32>
    %cst_72 = arith.constant dense<0.000000e+00> : vector<2x1xf32>
    %111 = tpu.matmul %110, %109, %cst_72 {dimension_numbers = #tpu.dot_dimension_numbers<[1], [0], [0], [1], [0, 0, 1, 1], [], []>} : vector<2x80xf32>, vector<80x1xf32>, vector<2x1xf32> -> vector<2x1xf32>
    %112 = arith.addf %107, %111 : vector<2x1xf32>
    %c216 = arith.constant 216 : index
    %c0_73 = arith.constant 0 : index
    %113 = vector.load %arg2[%c216, %c0_73] : memref<1336x128xf32, #tpu.memory_space<vmem>>, vector<2x10xf32>
    %c1008 = arith.constant 1008 : index
    %c0_74 = arith.constant 0 : index
    %114 = vector.load %arg2[%c1008, %c0_74] : memref<1336x128xf32, #tpu.memory_space<vmem>>, vector<80x1xf32>
    %cst_75 = arith.constant dense<0.000000e+00> : vector<2x80xf32>
    %115 = tpu.matmul %113, %98, %cst_75 {dimension_numbers = #tpu.dot_dimension_numbers<[1], [0], [0], [1], [0, 0, 1, 1], [], []>} : vector<2x10xf32>, vector<10x80xf32>, vector<2x80xf32> -> vector<2x80xf32>
    %cst_76 = arith.constant dense<0.000000e+00> : vector<2x1xf32>
    %116 = tpu.matmul %115, %114, %cst_76 {dimension_numbers = #tpu.dot_dimension_numbers<[1], [0], [0], [1], [0, 0, 1, 1], [], []>} : vector<2x80xf32>, vector<80x1xf32>, vector<2x1xf32> -> vector<2x1xf32>
    %117 = arith.addf %112, %116 : vector<2x1xf32>
    %c1328 = arith.constant 1328 : index
    %c0_77 = arith.constant 0 : index
    %118 = vector.load %arg2[%c1328, %c0_77] : memref<1336x128xf32, #tpu.memory_space<vmem>>, vector<1x1xf32>
    %119 = vector.broadcast %118 : vector<1x1xf32> to vector<2x1xf32>
    %120 = arith.addf %117, %119 : vector<2x1xf32>
    %c0_78 = arith.constant 0 : index
    %c0_79 = arith.constant 0 : index
    %121 = vector.load %arg3[%c0_78, %c0_79] : memref<2x1xf32, #tpu.memory_space<vmem>>, vector<2x1xf32>
    tpu.vector_store %arg3[%c0_78, %c0_79], %120 {strides = array<i32>} : memref<2x1xf32, #tpu.memory_space<vmem>>, vector<2x1xf32>,
    return
  }
  func.func @transform_0(%arg0: i32) -> (i32, i32) {
    %c0_i32 = arith.constant 0 : i32
    %c0_i32_0 = arith.constant 0 : i32
    %c0_i32_1 = arith.constant 0 : i32
    return %c0_i32, %c0_i32_0 : i32, i32
  }
  func.func @transform_1(%arg0: i32) -> (i32, i32) {
    %c0_i32 = arith.constant 0 : i32
    %c0_i32_0 = arith.constant 0 : i32
    %c0_i32_1 = arith.constant 0 : i32
    return %c0_i32, %c0_i32_0 : i32, i32
  }
  func.func @transform_2(%arg0: i32) -> (i32, i32) {
    %c0_i32 = arith.constant 0 : i32
    %c0_i32_0 = arith.constant 0 : i32
    %c0_i32_1 = arith.constant 0 : i32
    return %c0_i32, %c0_i32_0 : i32, i32
  }
}

</mosaic_0001>

<bundles_post_ra>
// kernel: discriminator_forward.1
= control target key start
LH: loop header
LB: loop body
LE: loop exit
PB: predicated region body
PF: predicated region fallthrough
CT: control target
= control target key end

     0   :  { %vm26_vm0 = vcmask 457728   ;;  %vm242_vm1 = vcmask 1043456   ;;  %vm4241_vm2 = vmmov 1   ;;  %vm229_vm4 = vcmask 228352   ;;  %s5081_s0 = inlined_call_operand.vmem [shape: f32[56,28], index: 0, kind: input, shape index: {}]   ;;  %s5082_s1 = inlined_call_operand.vmem [shape: f32[1336,128], index: 1, kind: input, shape index: {}]   ;;  %s5083_s2 = inlined_call_operand.vmem [shape: f32[2,1], index: 2, kind: output, shape index: {}]  }
   0x1   :  { %v11_v0 = vld [vmem:[%s5081_s0] sm:$0xff]  ;;  %v12_v1 = vld [vmem:[%s5081_s0 + $0x8] sm:$0xff]  ;;  %v13_v2 = vld [vmem:[%s5081_s0 + $0x10] sm:$0xff]  ;;  %v4242_v56 = vmov 0.0|0.0   ;;  %vm4244_vm5 = vmmov 0   ;;  %vm865_vm6 = vcmask 850944  }
   0x2   :  { %v4269_v3 = vpack.c.bf16 %v12_v1, %v11_v0  ;;  %v14_v4 = vld [vmem:[%s5081_s0 + $0x18] sm:$0xff]  ;;  %v15_v6 = vld [vmem:[%s5081_s0 + $0x20] sm:$0xff]  ;;  %v16_v7 = vld [vmem:[%s5081_s0 + $0x28] sm:$0xff]  ;;  %vm871_vm7 = vcmask 844800   ;;  %vm954_vm8 = vcmask 64512   ;;  %vm1241_vm9 = vcmask 211968  }
   0x3   :  { %v4274_v5 = vpack.c.bf16 %v14_v4, %v13_v2  ;;  %v124_v8 = vld [vmem:[%s5082_s1 + $0x20] sm:$0xff]  ;;  %v4290_v9 = vpack.c.bf16 %v16_v7, %v15_v6  ;;  %v4300_v10 = vld [vmem:[%s5081_s0 + $0x30] sm:$0xff]  ;;  %v129_v12 = vld [vmem:[%s5082_s1 + $0x108] sm:$0xff]  ;;  %vm1248_vm10 = vcmask 1041408   ;;  %vm1959_vm12 = vcmask 648192  }
   0x4   :  { %3856 = vmatprep.subr.bf16.mxu1 %v4269_v3  ;;  %3333 = vmatprep.mubr.msk.f32.mxu1 %vm26_vm0, %v124_v8  ;;  %v128_v11 = vld [vmem:[%s5082_s1 + $0x100] sm:$0xff]  ;;  %v130_v13 = vld [vmem:[%s5082_s1 + $0x110] sm:$0xff]  ;;  %v131_v14 = vld [vmem:[%s5082_s1 + $0x118] sm:$0xf]  ;;  %vm1957_vm13 = vcmask 654336   ;;  %vm2042_vm14 = vcmask 130048  }
   0x5   :  { %3858 = vmatpush3.bf16.msra.mxu1 %v4269_v3  ;;  %3844 = vmatprep.subr.bf16.mxu0 %v4269_v3  ;;  %v3867_v15 = vpack.c.bf16 %v129_v12, %v128_v11  ;;  %v125_v16 = vld [vmem:[%s5082_s1 + $0x28] sm:$0xff]  ;;  %v126_v17 = vld [vmem:[%s5082_s1 + $0x30] sm:$0xff]  ;;  %v3871_v18 = vpack.c.bf16 %v131_v14, %v130_v13  ;;  %vm4327_vm3 = vmpackc.low %vm242_vm1, %vm4241_vm2  ;;  %vm2309_vm15 = vcmask 80896  }
   0x6   :  { %3860 = vmatprep.subr.bf16.mxu1 %v4274_v5  ;;  %3846 = vmatpush3.bf16.msra.mxu0 %v4269_v3  ;;  %v127_v20 = vld [vmem:[%s5082_s1 + $0x38] sm:$0x3]  ;;  %v18_v21 = vld [vmem:[%s5082_s1] sm:$0xff]  ;;  %v19_v22 = vld [vmem:[%s5082_s1 + $0x8] sm:$0xff] }
   0x7   :  { %3848 = vmatprep.subr.bf16.mxu0 %v4274_v5  ;;  %3313 = vmatprep.mubr.msk.f32.mxu0 %vm26_vm0, %v18_v21  ;;  %v20_v23 = vld [vmem:[%s5082_s1 + $0x10] sm:$0xff]  ;;  %v21_v24 = vld [vmem:[%s5082_s1 + $0x18] sm:$0x3]  ;;  %v431_v29 = vld [vmem:[%s5082_s1 + $0x40] sm:$0xff] }
   0x8   :  { %v432_v30 = vld [vmem:[%s5082_s1 + $0x48] sm:$0xff]  ;;  %v433_v31 = vld [vmem:[%s5082_s1 + $0x50] sm:$0xff]  ;;  %v434_v32 = vld [vmem:[%s5082_s1 + $0x58] sm:$0x3] }
   0x9   :  { %3862 = vmatpush3.bf16.msra.mxu1 %v4274_v5  ;;  %v640_v33 = vld [vmem:[%s5082_s1 + $0x60] sm:$0xff]  ;;  %v641_v34 = vld [vmem:[%s5082_s1 + $0x68] sm:$0xff]  ;;  %v642_v35 = vld [vmem:[%s5082_s1 + $0x70] sm:$0xff] }
   0xa   :  { %3864 = vmatprep.subr.bf16.mxu1 %v4290_v9  ;;  %3850 = vmatpush3.bf16.msra.mxu0 %v4274_v5  ;;  %v643_v36 = vld [vmem:[%s5082_s1 + $0x78] sm:$0x3]  ;;  %v22_v37 = vld [vmem:[%s5082_s1 + $0xe0] sm:$0xff]  ;;  %v23_v38 = vld [vmem:[%s5082_s1 + $0xe8] sm:$0xff] }
   0xb   :  { %3852 = vmatprep.subr.bf16.mxu0 %v4290_v9  ;;  %v3877_v39 = vpack.c.bf16 %v23_v38, %v22_v37  ;;  %v24_v40 = vld [vmem:[%s5082_s1 + $0xf0] sm:$0xff]  ;;  %v25_v41 = vld [vmem:[%s5082_s1 + $0xf8] sm:$0xf]  ;;  %v435_v43 = vld [vmem:[%s5082_s1 + $0x120] sm:$0xff] }
   0xc   :  { %v3881_v42 = vpack.c.bf16 %v25_v41, %v24_v40  ;;  %v436_v44 = vld [vmem:[%s5082_s1 + $0x128] sm:$0xff]  ;;  %v437_v45 = vld [vmem:[%s5082_s1 + $0x130] sm:$0xff]  ;;  %v438_v48 = vld [vmem:[%s5082_s1 + $0x138] sm:$0xf] }
   0xd   :  { %3866 = vmatpush3.bf16.msra.mxu1 %v4290_v9  ;;  %v3899_v47 = vpack.c.bf16 %v436_v44, %v435_v43  ;;  %v3903_v50 = vpack.c.bf16 %v438_v48, %v437_v45  ;;  %v644_v53 = vld [vmem:[%s5082_s1 + $0x140] sm:$0xff]  ;;  %v645_v54 = vld [vmem:[%s5082_s1 + $0x148] sm:$0xff]  ;;  %v646_v61 = vld [vmem:[%s5082_s1 + $0x150] sm:$0xff] }
   0xe   :  { %3331 = vmatprep.subr.mxu1 %v4300_v10  ;;  %3854 = vmatpush3.bf16.msra.mxu0 %v4290_v9  ;;  %v3921_v55 = vpack.c.bf16 %v645_v54, %v644_v53  ;;  %v647_v62 = vld [vmem:[%s5082_s1 + $0x158] sm:$0xf]  ;;  %v849_v8 = vld [vmem:[%s5082_s1 + $0x440] sm:$0xff]  ;;  %v851_v11 = vld [vmem:[%s5082_s1 + $0x450] sm:$0xff]  ;;  %v1028_v53 = vlaneseq }
   0xf   :  { %3311 = vmatprep.subr.mxu0 %v4300_v10  ;;  %v3925_v1 = vpack.c.bf16 %v647_v62, %v646_v61  ;;  %v852_v12 = vld [vmem:[%s5082_s1 + $0x458] sm:$0xff]  ;;  %v853_v14 = vld [vmem:[%s5082_s1 + $0x460] sm:$0xff]  ;;  %v858_v21 = vld [vmem:[%s5082_s1 + $0x488] sm:$0xff] }
  0x10   :  { %v4495_v13 = vpack.c.bf16 %v852_v12, %v851_v11  ;;  %v1029_v54 = vshrl.u32 %v1028_v53, 7  ;;  %vm4591_vm11 = vmpackc.low %vm1248_vm10, %vm4241_vm2  ;;  %v1331_v53 = vld [vmem:[%s5082_s1 + $0x1d8] sm:$0xff] }
  0x11   :  { %3332 = vmatpush3.msra.mxu1 %v4300_v10 }
  0x12   :  { %3334 = vmatmul.mubr.msk.f32.vlgmr.msra.gmra.mrb[0].mxu1 %vm26_vm0, %v125_v16  ;;  %3868 = vmatprep.subr.bf16.mxu1 %v3867_v15 }
  0x13   :  { %3336 = vmatprep.mubr.msk.f32.mxu1 %vm26_vm0, %v126_v17  ;;  %3870 = vmatpush3.bf16.msra.mxu1 %v3867_v15  ;;  %v854_v15 = vld [vmem:[%s5082_s1 + $0x468] sm:$0xff]  ;;  %v855_v17 = vld [vmem:[%s5082_s1 + $0x470] sm:$0xff] }
  0x14   :  { %3873 = vmatprep.subr.msk.bf16.mxu1 %vm4327_vm3, %v3871_v18  ;;  %3312 = vmatpush3.msra.mxu0 %v4300_v10  ;;  %v4505_v16 = vpack.c.bf16 %v854_v15, %v853_v14 }
  0x15   :  { %3314 = vmatmul.mubr.msk.f32.vlgmr.msra.gmra.mrb[0].mxu0 %vm26_vm0, %v19_v22  ;;  %3878 = vmatprep.subr.bf16.mxu0 %v3877_v39 }
  0x16   :  { %3337 = vmatmul.mubr.msk.f32.gmra.mrb[2].mxu1 %vm26_vm0, %v127_v20  ;;  %3316 = vmatprep.mubr.msk.f32.mxu0 %vm26_vm0, %v20_v23  ;;  %v857_v20 = vld [vmem:[%s5082_s1 + $0x480] sm:$0xff]  ;;  %v859_v23 = vld [vmem:[%s5082_s1 + $0x490] sm:$0xff] }
  0x17   :  { %3876 = vmatpush3.bf16.msk.msra.mxu1 %vm4327_vm3, %v3871_v18  ;;  %3880 = vmatpush3.bf16.msra.mxu0 %v3877_v39  ;;  %v856_v18 = vld [vmem:[%s5082_s1 + $0x478] sm:$0xff]  ;;  %v3944_v22 = vpack.c.bf16 %v858_v21, %v857_v20  ;;  %v1327_v20 = vld [vmem:[%s5082_s1 + $0x90] sm:$0xff]  ;;  %v1226_v21 = vld [vmem:[%s5082_s1 + $0x80] sm:$0xff] }
  0x18   :  { %3888 = vmatprep.subr.bf16.mxu1 %v4269_v3  ;;  %3883 = vmatprep.subr.msk.bf16.mxu0 %vm4327_vm3, %v3881_v42  ;;  %v3941_v19 = vpack.c.bf16 %v856_v18, %v855_v17 }
  0x19   :  { %3317 = vmatmul.mubr.msk.f32.gmra.mrb[2].mxu0 %vm26_vm0, %v21_v24  ;;  %v860_v24 = vld [vmem:[%s5082_s1 + $0x498] sm:$0xff] }
  0x1b   :  { %3886 = vmatpush3.bf16.msk.msra.mxu0 %vm4327_vm3, %v3881_v42 }
  0x1c   :  { %3900 = vmatprep.subr.bf16.mxu0 %v3899_v47 }
  0xe5   :  { %v3335_v25 = vpop.f32.mrb[0].mxu1 }
  0xe6   :  { %v210_v26 = vpop.f32.mrb[1].mxu1 }
  0xe7   :  { %3347 = vmatprep.mubr.msk.f32.mxu1 %vm229_vm4, %v210_v26  ;;  %v4243_v26 = vmov 0.0  }
  0xe8   :  { %3348 = vmatmul.mubr.msk.f32.vlgmr.msra.gmra.mrb[4].mxu1 %vm229_vm4, %v3335_v25  ;;  %v3315_v46 = vpop.f32.mrb[0].mxu0  ;;  %v3947_v25 = vpack.c.bf16 %v860_v24, %v859_v23 }
  0xe9   :  { %3890 = vmatpush3.bf16.msra.mxu1 %v4269_v3  ;;  %v3338_v27 = vpop.f32.mrb[2].mxu1  ;;  %v105_v49 = vpop.f32.mrb[1].mxu0 }
  0xea   :  { %3892 = vmatprep.subr.bf16.mxu1 %v4274_v5  ;;  %v220_v28 = vpop.f32.mrb[3].mxu1  ;;  %3361 = vmatprep.mubr.msk.f32.mxu0 %vm229_vm4, %v105_v49 }
  0xeb   :  { %3350 = vmatprep.mubr.msk.f32.mxu1 %vm229_vm4, %v220_v28  ;;  %3362 = vmatmul.mubr.msk.f32.vlgmr.msra.gmra.mrb[4].mxu0 %vm229_vm4, %v3315_v46  ;;  %v862_v28 = vld [vmem:[%s5082_s1 + $0x4a8] sm:$0xff] }
  0xec   :  { %3351 = vmatmul.mubr.msk.f32.gmra.mrb[6].mxu1 %vm229_vm4, %v3338_v27  ;;  %v3318_v51 = vpop.f32.mrb[2].mxu0  ;;  %3902 = vmatpush3.bf16.msra.mxu0 %v3899_v47  ;;  %v861_v27 = vld [vmem:[%s5082_s1 + $0x4a0] sm:$0xff] }
  0xed   :  { %3894 = vmatpush3.bf16.msra.mxu1 %v4274_v5  ;;  %3381 = vmatprep.mubr.msk.f32.mxu1 %vm26_vm0, %v431_v29  ;;  %v115_v52 = vpop.f32.mrb[3].mxu0 }
  0xee   :  { %3896 = vmatprep.subr.bf16.mxu1 %v4290_v9  ;;  %3905 = vmatprep.subr.msk.bf16.mxu0 %vm4327_vm3, %v3903_v50 }
  0xef   :  { %3364 = vmatprep.mubr.msk.f32.mxu0 %vm229_vm4, %v115_v52 }
  0xf0   :  { %3365 = vmatmul.mubr.msk.f32.gmra.mrb[6].mxu0 %vm229_vm4, %v3318_v51 }
  0xf1   :  { %3898 = vmatpush3.bf16.msra.mxu1 %v4290_v9  ;;  %3908 = vmatpush3.bf16.msk.msra.mxu0 %vm4327_vm3, %v3903_v50 }
  0xf2   :  { %3379 = vmatprep.subr.mxu1 %v4300_v10  ;;  %3922 = vmatprep.subr.bf16.mxu0 %v3921_v55 }
  0xf5   :  { %3380 = vmatpush3.msra.mxu1 %v4300_v10 }
  0xf6   :  { %3382 = vmatmul.mubr.msk.f32.vlgmr.msra.gmra.mrb[8].mxu1 %vm26_vm0, %v432_v30  ;;  %3910 = vmatprep.subr.bf16.mxu1 %v4269_v3 }
  0xf7   :  { %3912 = vmatpush3.bf16.msra.mxu1 %v4269_v3  ;;  %3384 = vmatprep.mubr.msk.f32.mxu1 %vm26_vm0, %v433_v31 }
  0xf8   :  { %3914 = vmatprep.subr.bf16.mxu1 %v4274_v5 }
  0xfa   :  { %3385 = vmatmul.mubr.msk.f32.gmra.mrb[10].mxu1 %vm26_vm0, %v434_v32 }
  0xfb   :  { %3916 = vmatpush3.bf16.msra.mxu1 %v4274_v5  ;;  %3415 = vmatprep.mubr.msk.f32.mxu1 %vm26_vm0, %v640_v33 }
  0xfc   :  { %3918 = vmatprep.subr.bf16.mxu1 %v4290_v9 }
  0xff   :  { %3920 = vmatpush3.bf16.msra.mxu1 %v4290_v9  ;;  %v850_v9 = vld [vmem:[%s5082_s1 + $0x448] sm:$0xff] }
 0x100   :  { %3413 = vmatprep.subr.mxu1 %v4300_v10 }
 0x103   :  { %3414 = vmatpush3.msra.mxu1 %v4300_v10  ;;  %v4485_v10 = vpack.c.bf16 %v850_v9, %v849_v8 }
 0x104   :  { %3416 = vmatmul.mubr.msk.f32.vlgmr.msra.gmra.mrb[12].mxu1 %vm26_vm0, %v641_v34  ;;  %3931 = vmatprep.subr.bf16.mxu1 %v4242_v56 }
 0x105   :  { %3418 = vmatprep.mubr.msk.f32.mxu1 %vm26_vm0, %v642_v35  ;;  %3933 = vmatpush3.bf16.msra.mxu1 %v4485_v10 }
 0x106   :  { %3934 = vmatprep.subr.bf16.mxu1 %v4242_v56 }
 0x108   :  { %3419 = vmatmul.mubr.msk.f32.gmra.mrb[14].mxu1 %vm26_vm0, %v643_v36  ;;  %vm2938_vm0 = vcmask 1024  }
 0x109   :  { %3936 = vmatpush3.bf16.msra.mxu1 %v4495_v13  ;;  %3461 = vmatprep.mubr.msk.f32.mxu1 %vm4244_vm5, %v4243_v26 }
 0x10a   :  { %3937 = vmatprep.subr.bf16.mxu1 %v4242_v56 }
 0x10d   :  { %3939 = vmatpush3.bf16.msra.mxu1 %v4505_v16 }
 0x10e   :  { %3940 = vmatprep.subr.bf16.mxu1 %v4242_v56 }
 0x111   :  { %3942 = vmatpush3.bf16.msra.mxu1 %v3941_v19 }
 0x112   :  { %3943 = vmatprep.subr.bf16.mxu1 %v4242_v56 }
 0x115   :  { %3945 = vmatpush3.bf16.msra.mxu1 %v3944_v22 }
 0x116   :  { %3946 = vmatprep.subr.bf16.mxu1 %v4242_v56 }
 0x119   :  { %3948 = vmatpush3.bf16.msra.mxu1 %v3947_v25 }
 0x11a   :  { %3459 = vmatprep.subr.mxu1 %v4243_v26 }
 0x11d   :  { %3460 = vmatpush3.msra.mxu1 %v861_v27 }
 0x11e   :  { %3498 = vmatprep.subr.mxu1 %v4243_v26 }
 0x1bb   :  { %v4453_v57 = vpop.f32.mrb[4].mxu1 }
 0x1bc   :  { %v4455_v58 = vpop.f32.mrb[5].mxu1 }
 0x1bf   :  { %v4457_v59 = vpop.f32.mrb[6].mxu1 }
 0x1c0   :  { %v4459_v60 = vpop.f32.mrb[7].mxu1 }
 0x1c9   :  { %v3383_v63 = vpop.f32.mrb[8].mxu1 }
 0x1ca   :  { %v517_v0 = vpop.f32.mrb[9].mxu1 }
 0x1cb   :  { %3395 = vmatprep.mubr.msk.f32.mxu0 %vm229_vm4, %v517_v0 }
 0x1cc   :  { %3396 = vmatmul.mubr.msk.f32.vlgmr.msra.gmra.mrb[4].mxu0 %vm229_vm4, %v3383_v63 }
 0x1cd   :  { %v3386_v2 = vpop.f32.mrb[10].mxu1  ;;  %3924 = vmatpush3.bf16.msra.mxu0 %v3921_v55  ;;  %v4566_v55 = vsub.s32 0, %v1029_v54  ;;  %v1332_v54 = vld [vmem:[%s5082_s1 + $0x1e0] sm:$0xff] }
 0x1ce   :  { %v527_v3 = vpop.f32.mrb[11].mxu1  ;;  %3927 = vmatprep.subr.msk.bf16.mxu0 %vm4327_vm3, %v3925_v1 }
 0x1cf   :  { %3398 = vmatprep.mubr.msk.f32.mxu0 %vm229_vm4, %v527_v3 }
 0x1d0   :  { %3399 = vmatmul.mubr.msk.f32.gmra.mrb[6].mxu0 %vm229_vm4, %v3386_v2 }
 0x1d1   :  { %3930 = vmatpush3.bf16.msk.msra.mxu0 %vm4327_vm3, %v3925_v1 }
 0x1d2   :  { %3464 = vmatprep.subr.mxu0 %v4243_v26 }
 0x1d7   :  { %v3417_v4 = vpop.f32.mrb[12].mxu1 }
 0x1d8   :  { %v726_v5 = vpop.f32.mrb[13].mxu1 }
 0x1d9   :  { %3429 = vmatprep.mubr.msk.f32.mxu0 %vm229_vm4, %v726_v5 }
 0x1da   :  { %3430 = vmatmul.mubr.msk.f32.vlgmr.msra.gmra.mrb[4].mxu0 %vm229_vm4, %v3417_v4 }
 0x1db   :  { %v3420_v6 = vpop.f32.mrb[14].mxu1  ;;  %3465 = vmatpush3.msra.mxu0 %v862_v28 }
 0x1dc   :  { %v736_v7 = vpop.f32.mrb[15].mxu1  ;;  %3949 = vmatprep.subr.bf16.mxu0 %v4242_v56 }
 0x1dd   :  { %3432 = vmatprep.mubr.msk.f32.mxu0 %vm229_vm4, %v736_v7 }
 0x1de   :  { %3433 = vmatmul.mubr.msk.f32.gmra.mrb[6].mxu0 %vm229_vm4, %v3420_v6 }
 0x1df   :  { %3466 = vmatprep.mubr.msk.f32.mxu0 %vm4244_vm5, %v4243_v26 }
 0x2ad   :  { %v3431_v29 = vpop.f32.mrb[4].mxu0 }
 0x2ae   :  { %v4215_v30 = vadd.f32 %v3431_v29, %v4453_v57  ;;  %v826_v31 = vpop.f32.mrb[5].mxu0 }
 0x2af   :  { %v4216_v32 = vadd.f32 %v826_v31, %v4455_v58 }
 0x2b0   :  { %v867_v33 = vsel %vm865_vm6, %v4215_v30, 0.0 }
 0x2b1   :  { %v866_v34 = vsel %vm865_vm6, %v4216_v32, 0.0  ;;  %v3434_v35 = vpop.f32.mrb[6].mxu0 }
 0x2b2   :  { %v4217_v36 = vadd.f32 %v3434_v35, %v4457_v59  ;;  %v836_v37 = vpop.f32.mrb[7].mxu0  ;;  %v868_v39 = vadd.f32 %v867_v33, %v866_v34 }
 0x2b3   :  { %v4218_v38 = vadd.f32 %v836_v37, %v4459_v60 }
 0x2b4   :  { %v872_v42 = vsel %vm871_vm7, %v4217_v36, 0.0 }
 0x2b5   :  { %v869_v40 = vsel %vm865_vm6, %v4218_v38, 0.0 }
 0x2b6   :  { %v870_v41 = vadd.f32 %v869_v40, %v868_v39 }
 0x2b8   :  { %v873_v43 = vadd.f32 %v872_v42, %v870_v41 }
 0x2ba   :  { %v874_v44 = vrot.slane %v873_v43, 4 }
 0x2bc   :  { %v875_v45 = vadd.f32 %v874_v44, %v873_v43 }
 0x2be   :  { %v876_v46 = vrot.slane %v875_v45, 2 }
 0x2c0   :  { %v877_v47 = vadd.f32 %v876_v46, %v875_v45 }
 0x2c2   :  { %v878_v48 = vrot.slane %v877_v47, 1 }
 0x2c4   :  { %v879_v49 = vadd.f32 %v878_v48, %v877_v47  ;;  %v2776_v48 = vld [vmem:[%s5082_s1 + $0x3f8] sm:$0xff] }
 0x2c6   :  { %3462 = vmatmul.mubr.msk.f32.vlgmr.msra.gmra.mrb[16].mxu1 %vm865_vm6, %v879_v49  ;;  %v1329_v49 = vld [vmem:[%s5082_s1 + $0x1c8] sm:$0xff] }
 0x2c7   :  { %3499 = vmatpush3.msra.mxu1 %v862_v28  ;;  %3500 = vmatprep.mubr.msk.f32.mxu1 %vm4244_vm5, %v4243_v26 }
 0x399   :  { %v949_v50 = vpop.f32.mrb[16].mxu1 }
 0x39a   :  { %v953_v51 = vmul.f32 0.00295858, %v949_v50  ;;  %v3463_v52 = vpop.f32.mrb[17].mxu1  ;;  %v1330_v50 = vld [vmem:[%s5082_s1 + $0x1d0] sm:$0xff] }
 0x39b   :  { %v3987_v52 = vpack.c.bf16 %v1330_v50, %v1329_v49 }
 0x39c   :  { %3467 = vmatmul.mubr.msk.f32.vlgmr.msra.gmra.mrb[8].mxu0 %vm954_vm8, %v953_v51 }
 0x39d   :  { %3951 = vmatpush3.bf16.msra.mxu0 %v4485_v10  ;;  %3495 = vmatprep.mubr.msk.f32.mxu0 %vm4244_vm5, %v4243_v26 }
 0x39e   :  { %3952 = vmatprep.subr.bf16.mxu0 %v4242_v56 }
 0x3a1   :  { %3954 = vmatpush3.bf16.msra.mxu0 %v4495_v13 }
 0x3a2   :  { %3955 = vmatprep.subr.bf16.mxu0 %v4242_v56 }
 0x3a5   :  { %3957 = vmatpush3.bf16.msra.mxu0 %v4505_v16 }
 0x3a6   :  { %3958 = vmatprep.subr.bf16.mxu0 %v4242_v56 }
 0x3a9   :  { %3960 = vmatpush3.bf16.msra.mxu0 %v3941_v19 }
 0x3aa   :  { %3961 = vmatprep.subr.bf16.mxu0 %v4242_v56 }
 0x3ad   :  { %3963 = vmatpush3.bf16.msra.mxu0 %v3944_v22 }
 0x3ae   :  { %3964 = vmatprep.subr.bf16.mxu0 %v4242_v56 }
 0x3b1   :  { %3966 = vmatpush3.bf16.msra.mxu0 %v3947_v25  ;;  %v863_v25 = vld [vmem:[%s5082_s1 + $0x510] sm:$0x1] }
 0x3b2   :  { %3493 = vmatprep.subr.mxu0 %v4243_v26 }
 0x3b5   :  { %3494 = vmatpush3.msra.mxu0 %v861_v27 }
 0x46f   :  { %v1024_v57 = vpop.f32.mrb[8].mxu0 }
 0x470   :  { %v1031_v58 = vrot.slane %v1024_v57, %v4566_v55  ;;  %v3468_v59 = vpop.f32.mrb[9].mxu0  ;;  %v1328_v57 = vld [vmem:[%s5082_s1 + $0x98] sm:$0x3] }
 0x471   :  { %v1585_v59 = vld [vmem:[%s5082_s1 + $0xa0] sm:$0xff] }
 0x472   :  { %v1032_v60 = vsub.f32 %v4216_v32, %v1031_v58  ;;  %v1033_v61 = vsub.f32 %v4215_v30, %v1031_v58  ;;  %v1034_v62 = vsub.f32 %v4218_v38, %v1031_v58  ;;  %v1035_v63 = vsub.f32 %v4217_v36, %v1031_v58  ;;  %v2984_v30 = vld [vmem:[%s5082_s1 + $0x518] ss:$0 sm:$0xff]  ;;  %v1227_v58 = vld [vmem:[%s5082_s1 + $0x88] sm:$0x3] }
 0x474   :  { %v1036_v0 = vmul.f32 %v1032_v60, %v1032_v60  ;;  %v1037_v1 = vmul.f32 %v1033_v61, %v1033_v61  ;;  %v1038_v2 = vmul.f32 %v1034_v62, %v1034_v62  ;;  %v1039_v3 = vmul.f32 %v1035_v63, %v1035_v63 }
 0x476   :  { %v1040_v4 = vsel %vm865_vm6, %v1036_v0, 0.0  ;;  %v1041_v5 = vsel %vm865_vm6, %v1037_v1, 0.0  ;;  %v1043_v7 = vsel %vm865_vm6, %v1038_v2, 0.0  ;;  %v1045_v9 = vsel %vm871_vm7, %v1039_v3, 0.0  ;;  %v1335_v0 = vld [vmem:[%s5082_s1 + $0x1f8] sm:$0xff]  ;;  %v1336_v1 = vld [vmem:[%s5082_s1 + $0x200] sm:$0xff] }
 0x477   :  { %v1042_v6 = vadd.f32 %v1041_v5, %v1040_v4  ;;  %v1586_v2 = vld [vmem:[%s5082_s1 + $0xa8] sm:$0x3]  ;;  %v1764_v3 = vld [vmem:[%s5082_s1 + $0xb0] sm:$0xff]  ;;  %v3999_v4 = vpack.c.bf16 %v1336_v1, %v1335_v0 }
 0x478   :  { %v1337_v5 = vld [vmem:[%s5082_s1 + $0x208] sm:$0xff]  ;;  %v1599_v1 = vld [vmem:[%s5082_s1 + $0x290] sm:$0xff] }
 0x479   :  { %v1044_v8 = vadd.f32 %v1043_v7, %v1042_v6  ;;  %v1338_v6 = vld [vmem:[%s5082_s1 + $0x210] sm:$0xff] }
 0x47a   :  { %v4003_v7 = vpack.c.bf16 %v1338_v6, %v1337_v5  ;;  %v1769_v5 = vld [vmem:[%s5082_s1 + $0x2b0] sm:$0xff] }
 0x47b   :  { %v1046_v10 = vadd.f32 %v1045_v9, %v1044_v8  ;;  %v1339_v8 = vld [vmem:[%s5082_s1 + $0x218] sm:$0xff]  ;;  %v1340_v9 = vld [vmem:[%s5082_s1 + $0x220] sm:$0xff] }
 0x47d   :  { %v1047_v11 = vrot.slane %v1046_v10, 4 }
 0x47f   :  { %v1048_v12 = vadd.f32 %v1047_v11, %v1046_v10  ;;  %v1765_v10 = vld [vmem:[%s5082_s1 + $0xb8] sm:$0x3]  ;;  %v4007_v11 = vpack.c.bf16 %v1340_v9, %v1339_v8  ;;  %v1771_v9 = vld [vmem:[%s5082_s1 + $0x2c0] sm:$0xff] }
 0x480   :  { %v1770_v8 = vld [vmem:[%s5082_s1 + $0x2b8] sm:$0xff] }
 0x481   :  { %v1049_v13 = vrot.slane %v1048_v12, 2 }
 0x483   :  { %v1050_v14 = vadd.f32 %v1049_v13, %v1048_v12  ;;  %v1341_v12 = vld [vmem:[%s5082_s1 + $0x228] sm:$0xff]  ;;  %v1228_v13 = vld [vmem:[%s5082_s1 + $0x160] sm:$0xff] }
 0x485   :  { %v1051_v15 = vrot.slane %v1050_v14, 1 }
 0x487   :  { %v1052_v16 = vadd.f32 %v1051_v15, %v1050_v14  ;;  %v1229_v14 = vld [vmem:[%s5082_s1 + $0x168] sm:$0xff] }
 0x488   :  { %v4011_v15 = vpack.c.bf16 %v1229_v14, %v1228_v13  ;;  %v1774_v14 = vld [vmem:[%s5082_s1 + $0x2d8] sm:$0xff] }
 0x489   :  { %3496 = vmatmul.mubr.msk.f32.vlgmr.msra.gmra.mrb[10].mxu0 %vm865_vm6, %v1052_v16  ;;  %v1943_v16 = vld [vmem:[%s5082_s1 + $0x4b0] sm:$0xff] }
 0x48a   :  { %3522 = vmatprep.mubr.msk.f32.mxu0 %vm1241_vm9, %v1327_v20  ;;  %v1231_v20 = vld [vmem:[%s5082_s1 + $0x178] sm:$0xff] }
 0x55c   :  { %v1122_v17 = vpop.f32.mrb[10].mxu0 }
 0x55d   :  { %v1126_v18 = vmul.f32 0.00295858, %v1122_v17  ;;  %v3497_v19 = vpop.f32.mrb[11].mxu0  ;;  %v1944_v17 = vld [vmem:[%s5082_s1 + $0x4b8] sm:$0xff] }
 0x55e   :  { %v1230_v19 = vld [vmem:[%s5082_s1 + $0x170] sm:$0xff] }
 0x55f   :  { %3501 = vmatmul.mubr.msk.f32.vlgmr.msra.gmra.mrb[18].mxu1 %vm954_vm8, %v1126_v18  ;;  %v4689_v18 = vpack.c.bf16 %v1944_v17, %v1943_v16  ;;  %v1776_v17 = vld [vmem:[%s5082_s1 + $0x2e8] sm:$0xff] }
 0x560   :  { %3511 = vmatprep.mubr.msk.f32.mxu1 %vm1241_vm9, %v1226_v21 }
 0x632   :  { %v1196_v22 = vpop.f32.mrb[18].mxu1 }
 0x633   :  { %v1197_v23 = vadd.f32 1e-05, %v1196_v22  ;;  %v3502_v24 = vpop.f32.mrb[19].mxu1 }
 0x634   :  { %v4015_v24 = vpack.c.bf16 %v1231_v20, %v1230_v19  ;;  %v1777_v19 = vld [vmem:[%s5082_s1 + $0x2f0] sm:$0xff] }
 0x635   :  { %4237 = vrsqrt.f32 %v1197_v23  ;;  %v4099_v20 = vpack.c.bf16 %v1777_v19, %v1776_v17 }
 0x63f   :  { %v4238_v27 = vpop.eup %4237 }
 0x640   :  { %v1201_v28 = vmul.f32 %v4238_v27, %v863_v25  ;;  %v1232_v27 = vld [vmem:[%s5082_s1 + $0x180] sm:$0xff] }
 0x642   :  { %v1205_v29 = vrot.slane %v1201_v28, %v4566_v55  ;;  %v1233_v28 = vld [vmem:[%s5082_s1 + $0x188] sm:$0xff] }
 0x644   :  { %v1206_v31 = vmul.f32 %v1205_v29, %v1032_v60  ;;  %v1207_v32 = vmul.f32 %v1205_v29, %v1033_v61  ;;  %v1208_v33 = vmul.f32 %v1205_v29, %v1034_v62  ;;  %v1209_v34 = vmul.f32 %v1205_v29, %v1035_v63  ;;  %v1333_v61 = vld [vmem:[%s5082_s1 + $0x1e8] sm:$0xff]  ;;  %v1334_v62 = vld [vmem:[%s5082_s1 + $0x1f0] sm:$0xff] }
 0x645   :  { %v3991_v60 = vpack.c.bf16 %v1332_v54, %v1331_v53  ;;  %v3995_v63 = vpack.c.bf16 %v1334_v62, %v1333_v61  ;;  %v4019_v29 = vpack.c.bf16 %v1233_v28, %v1232_v27  ;;  %v1593_v54 = vld [vmem:[%s5082_s1 + $0x260] sm:$0xff]  ;;  %v1948_v27 = vld [vmem:[%s5082_s1 + $0x4d8] sm:$0xff] }
 0x646   :  { %v1214_v35 = vadd.f32 %v2984_v30, %v1206_v31  ;;  %v1215_v36 = vadd.f32 %v2984_v30, %v1207_v32  ;;  %v1216_v37 = vadd.f32 %v2984_v30, %v1208_v33  ;;  %v1217_v38 = vadd.f32 %v2984_v30, %v1209_v34  ;;  %v1234_v30 = vld [vmem:[%s5082_s1 + $0x190] sm:$0xff]  ;;  %v1235_v31 = vld [vmem:[%s5082_s1 + $0x198] sm:$0xff]  ;;  %v1597_v62 = vld [vmem:[%s5082_s1 + $0x280] sm:$0xff] }
 0x647   :  { %v4023_v33 = vpack.c.bf16 %v1235_v31, %v1234_v30  ;;  %v1950_v30 = vld [vmem:[%s5082_s1 + $0x4e8] sm:$0xff] }
 0x648   :  { %v1218_v39 = vmul.f32 0.2, %v1214_v35  ;;  %v1219_v40 = vmul.f32 0.2, %v1215_v36  ;;  %v1220_v41 = vmul.f32 0.2, %v1216_v37 }
 0x649   :  { %v1221_v42 = vmul.f32 0.2, %v1217_v38 }
 0x64a   :  { %v1222_v43 = vmax.f32 %v1214_v35, %v1218_v39  ;;  %v1223_v44 = vmax.f32 %v1215_v36, %v1219_v40  ;;  %v1224_v45 = vmax.f32 %v1216_v37, %v1220_v41  ;;  %v1236_v35 = vld [vmem:[%s5082_s1 + $0x1a0] sm:$0xff]  ;;  %v1237_v36 = vld [vmem:[%s5082_s1 + $0x1a8] sm:$0xff]  ;;  %v1239_v39 = vld [vmem:[%s5082_s1 + $0x1b8] sm:$0xff] }
 0x64b   :  { %v1225_v46 = vmax.f32 %v1217_v38, %v1221_v42  ;;  %v4027_v37 = vpack.c.bf16 %v1237_v36, %v1236_v35  ;;  %v1238_v38 = vld [vmem:[%s5082_s1 + $0x1b0] sm:$0xff] }
 0x64c   :  { %v3967_v47 = vpack.c.bf16 %v1223_v44, %v1222_v43  ;;  %v4031_v41 = vpack.c.bf16 %v1239_v39, %v1238_v38  ;;  %v1240_v43 = vld [vmem:[%s5082_s1 + $0x1c0] sm:$0xff]  ;;  %v1587_v44 = vld [vmem:[%s5082_s1 + $0x230] sm:$0xff] }
 0x64d   :  { %v3971_v51 = vpack.c.bf16 %v1225_v46, %v1224_v45  ;;  %v1588_v45 = vld [vmem:[%s5082_s1 + $0x238] sm:$0xff]  ;;  %v1589_v46 = vld [vmem:[%s5082_s1 + $0x240] sm:$0xff] }
 0x64e   :  { %3968 = vmatprep.subr.bf16.mxu1 %v3967_v47  ;;  %3978 = vmatprep.subr.bf16.mxu0 %v3967_v47  ;;  %v4045_v49 = vpack.c.bf16 %v1588_v45, %v1587_v44 }
 0x64f   :  { %3970 = vmatpush3.bf16.msra.mxu1 %v3967_v47  ;;  %3980 = vmatpush3.bf16.msra.mxu0 %v3967_v47 }
 0x650   :  { %3973 = vmatprep.subr.msk.bf16.mxu1 %vm4591_vm11, %v3971_v51  ;;  %3983 = vmatprep.subr.msk.bf16.mxu0 %vm4591_vm11, %v3971_v51 }
 0x653   :  { %3976 = vmatpush3.bf16.msk.msra.mxu1 %vm4591_vm11, %v3971_v51  ;;  %3986 = vmatpush3.bf16.msk.msra.mxu0 %vm4591_vm11, %v3971_v51 }
 0x654   :  { %4036 = vmatprep.subr.bf16.mxu0 %v3967_v47  ;;  %3988 = vmatprep.subr.bf16.mxu1 %v3987_v52 }
 0x656   :  { %3523 = vmatmul.mubr.msk.f32.vlgmr.msra.gmra.mrb[12].mxu0 %vm1241_vm9, %v1328_v57  ;;  %3512 = vmatmul.mubr.msk.f32.vlgmr.msra.gmra.mrb[20].mxu1 %vm1241_vm9, %v1227_v58  ;;  %v1594_v57 = vld [vmem:[%s5082_s1 + $0x268] sm:$0xff] }
 0x657   :  { %4038 = vmatpush3.bf16.msra.mxu0 %v3967_v47  ;;  %3591 = vmatprep.mubr.msk.f32.mxu0 %vm1241_vm9, %v1585_v59  ;;  %v4057_v58 = vpack.c.bf16 %v1594_v57, %v1593_v54  ;;  %v1595_v59 = vld [vmem:[%s5082_s1 + $0x270] sm:$0xff] }
 0x658   :  { %4041 = vmatprep.subr.msk.bf16.mxu0 %vm4591_vm11, %v3971_v51  ;;  %3990 = vmatpush3.bf16.msra.mxu1 %v3987_v52  ;;  %v1592_v52 = vld [vmem:[%s5082_s1 + $0x258] sm:$0xff] }
 0x659   :  { %3992 = vmatprep.subr.bf16.mxu1 %v3991_v60 }
 0x65b   :  { %4044 = vmatpush3.bf16.msk.msra.mxu0 %vm4591_vm11, %v3971_v51 }
 0x65c   :  { %4070 = vmatprep.subr.bf16.mxu0 %v3967_v47  ;;  %3994 = vmatpush3.bf16.msra.mxu1 %v3991_v60  ;;  %v1596_v60 = vld [vmem:[%s5082_s1 + $0x278] sm:$0xff] }
 0x65d   :  { %3996 = vmatprep.subr.bf16.mxu1 %v3995_v63  ;;  %v4061_v61 = vpack.c.bf16 %v1596_v60, %v1595_v59 }
 0x65e   :  { %3592 = vmatmul.mubr.msk.f32.vlgmr.msra.gmra.mrb[14].mxu0 %vm1241_vm9, %v1586_v2  ;;  %v1766_v2 = vld [vmem:[%s5082_s1 + $0x298] sm:$0xff] }
 0x65f   :  { %4072 = vmatpush3.bf16.msra.mxu0 %v3967_v47  ;;  %3631 = vmatprep.mubr.msk.f32.mxu0 %vm1241_vm9, %v1764_v3  ;;  %v1590_v47 = vld [vmem:[%s5082_s1 + $0x248] sm:$0xff]  ;;  %v1767_v3 = vld [vmem:[%s5082_s1 + $0x2a0] sm:$0xff] }
 0x660   :  { %4075 = vmatprep.subr.msk.bf16.mxu0 %vm4591_vm11, %v3971_v51  ;;  %3998 = vmatpush3.bf16.msra.mxu1 %v3995_v63  ;;  %v4049_v50 = vpack.c.bf16 %v1590_v47, %v1589_v46  ;;  %v1598_v63 = vld [vmem:[%s5082_s1 + $0x288] sm:$0xff]  ;;  %v4079_v6 = vpack.c.bf16 %v1767_v3, %v1766_v2  ;;  %v1953_v46 = vld [vmem:[%s5082_s1 + $0x500] sm:$0xff] }
 0x661   :  { %4000 = vmatprep.subr.bf16.mxu1 %v3999_v4  ;;  %v4065_v0 = vpack.c.bf16 %v1598_v63, %v1597_v62  ;;  %v1954_v47 = vld [vmem:[%s5082_s1 + $0x508] sm:$0xff] }
 0x663   :  { %4078 = vmatpush3.bf16.msk.msra.mxu0 %vm4591_vm11, %v3971_v51  ;;  %v1591_v51 = vld [vmem:[%s5082_s1 + $0x250] sm:$0xff] }
 0x664   :  { %4002 = vmatpush3.bf16.msra.mxu1 %v3999_v4  ;;  %4103 = vmatprep.subr.bf16.mxu0 %v4242_v56  ;;  %v4053_v53 = vpack.c.bf16 %v1592_v52, %v1591_v51  ;;  %v1768_v4 = vld [vmem:[%s5082_s1 + $0x2a8] sm:$0xff] }
 0x665   :  { %4004 = vmatprep.subr.bf16.mxu1 %v4003_v7 }
 0x666   :  { %3632 = vmatmul.mubr.msk.f32.vlgmr.msra.gmra.mrb[16].mxu0 %vm1241_vm9, %v1765_v10  ;;  %v4087_v10 = vpack.c.bf16 %v1771_v9, %v1770_v8 }
 0x667   :  { %3683 = vmatprep.mubr.msk.f32.mxu0 %vm4244_vm5, %v4243_v26  ;;  %4105 = vmatpush3.bf16.msra.mxu0 %v4689_v18 }
 0x668   :  { %4006 = vmatpush3.bf16.msra.mxu1 %v4003_v7  ;;  %4106 = vmatprep.subr.bf16.mxu0 %v4242_v56  ;;  %v4083_v7 = vpack.c.bf16 %v1769_v5, %v1768_v4 }
 0x669   :  { %4008 = vmatprep.subr.bf16.mxu1 %v4007_v11 }
 0x66c   :  { %4010 = vmatpush3.bf16.msra.mxu1 %v4007_v11  ;;  %v1772_v11 = vld [vmem:[%s5082_s1 + $0x2c8] sm:$0xff] }
 0x66d   :  { %3549 = vmatprep.subr.mxu1 %v1341_v12 }
 0x670   :  { %3550 = vmatpush3.msra.mxu1 %v1341_v12  ;;  %v1773_v12 = vld [vmem:[%s5082_s1 + $0x2d0] sm:$0xff] }
 0x671   :  { %4012 = vmatprep.subr.bf16.mxu1 %v4011_v15  ;;  %v4091_v13 = vpack.c.bf16 %v1773_v12, %v1772_v11  ;;  %v1955_v12 = vld [vmem:[%s5082_s1 + $0x520] sm:$0x1] }
 0x729   :  { %v3524_v21 = vpop.f32.mrb[12].mxu0  ;;  %v3513_v22 = vpop.f32.mrb[20].mxu1 }
 0x72a   :  { %v1414_v23 = vpop.f32.mrb[13].mxu0  ;;  %v1318_v25 = vpop.f32.mrb[21].mxu1 }
 0x72b   :  { %3551 = vmatprep.mubr.msk.f32.mxu1 %vm865_vm6, %v1414_v23  ;;  %v1946_v23 = vld [vmem:[%s5082_s1 + $0x4c8] sm:$0xff] }
 0x72c   :  { %3552 = vmatmul.mubr.msk.f32.vlgmr.msra.gmra.mrb[22].mxu1 %vm865_vm6, %v3524_v21  ;;  %v1778_v21 = vld [vmem:[%s5082_s1 + $0x2f8] sm:$0xff] }
 0x72d   :  { %4014 = vmatpush3.bf16.msra.mxu1 %v4011_v15  ;;  %3580 = vmatprep.mubr.msk.f32.mxu1 %vm865_vm6, %v1318_v25  ;;  %v1775_v15 = vld [vmem:[%s5082_s1 + $0x2e0] sm:$0xff]  ;;  %v1947_v25 = vld [vmem:[%s5082_s1 + $0x4d0] sm:$0xff] }
 0x72e   :  { %4016 = vmatprep.subr.bf16.mxu1 %v4015_v24  ;;  %v4095_v16 = vpack.c.bf16 %v1775_v15, %v1774_v14  ;;  %v4110_v28 = vpack.c.bf16 %v1948_v27, %v1947_v25 }
 0x731   :  { %4018 = vmatpush3.bf16.msra.mxu1 %v4015_v24  ;;  %v4714_v32 = vpop.f32.mrb[14].mxu0 }
 0x732   :  { %4020 = vmatprep.subr.bf16.mxu1 %v4019_v29  ;;  %v1672_v34 = vpop.f32.mrb[15].mxu0 }
 0x735   :  { %4022 = vmatpush3.bf16.msra.mxu1 %v4019_v29  ;;  %v1949_v29 = vld [vmem:[%s5082_s1 + $0x4e0] sm:$0xff] }
 0x736   :  { %4024 = vmatprep.subr.bf16.mxu1 %v4023_v33  ;;  %v4113_v31 = vpack.c.bf16 %v1950_v30, %v1949_v29  ;;  %v2387_v29 = vld [vmem:[%s5082_s1 + $0x350] sm:$0xff]  ;;  %v2388_v30 = vld [vmem:[%s5082_s1 + $0x358] sm:$0xff] }
 0x739   :  { %4026 = vmatpush3.bf16.msra.mxu1 %v4023_v33  ;;  %v4728_v40 = vpop.f32.mrb[16].mxu0  ;;  %v1952_v33 = vld [vmem:[%s5082_s1 + $0x4f8] sm:$0xff] }
 0x73a   :  { %4028 = vmatprep.subr.bf16.mxu1 %v4027_v37  ;;  %v1851_v42 = vpop.f32.mrb[17].mxu0 }
 0x73d   :  { %4030 = vmatpush3.bf16.msra.mxu1 %v4027_v37 }
 0x73e   :  { %4032 = vmatprep.subr.bf16.mxu1 %v4031_v41 }
 0x741   :  { %4034 = vmatpush3.bf16.msra.mxu1 %v4031_v41 }
 0x742   :  { %3578 = vmatprep.subr.mxu1 %v1240_v43 }
 0x745   :  { %3579 = vmatpush3.msra.mxu1 %v1240_v43 }
 0x746   :  { %3581 = vmatmul.mubr.msk.f32.vlgmr.msra.gmra.mrb[22].mxu1 %vm865_vm6, %v3513_v22  ;;  %4046 = vmatprep.subr.bf16.mxu1 %v4045_v49  ;;  %v1945_v22 = vld [vmem:[%s5082_s1 + $0x4c0] sm:$0xff] }
 0x747   :  { %4048 = vmatpush3.bf16.msra.mxu1 %v4045_v49  ;;  %3620 = vmatprep.mubr.msk.f32.mxu1 %vm865_vm6, %v1672_v34  ;;  %v4107_v24 = vpack.c.bf16 %v1946_v23, %v1945_v22  ;;  %v4119_v49 = vpack.c.bf16 %v1954_v47, %v1953_v46  ;;  %v2618_v46 = vld [vmem:[%s5082_s1 + $0x3a8] sm:$0xff] }
 0x748   :  { %4050 = vmatprep.subr.bf16.mxu1 %v4049_v50 }
 0x749   :  { %4108 = vmatpush3.bf16.msra.mxu0 %v4107_v24 }
 0x74a   :  { %4109 = vmatprep.subr.bf16.mxu0 %v4242_v56 }
 0x74b   :  { %4052 = vmatpush3.bf16.msra.mxu1 %v4049_v50 }
 0x74c   :  { %4054 = vmatprep.subr.bf16.mxu1 %v4053_v53 }
 0x74d   :  { %4111 = vmatpush3.bf16.msra.mxu0 %v4110_v28 }
 0x74e   :  { %4112 = vmatprep.subr.bf16.mxu0 %v4242_v56 }
 0x74f   :  { %4056 = vmatpush3.bf16.msra.mxu1 %v4053_v53 }
 0x750   :  { %4058 = vmatprep.subr.bf16.mxu1 %v4057_v58 }
 0x751   :  { %4114 = vmatpush3.bf16.msra.mxu0 %v4113_v31 }
 0x752   :  { %4115 = vmatprep.subr.bf16.mxu0 %v4242_v56 }
 0x753   :  { %4060 = vmatpush3.bf16.msra.mxu1 %v4057_v58 }
 0x754   :  { %4062 = vmatprep.subr.bf16.mxu1 %v4061_v61 }
 0x757   :  { %4064 = vmatpush3.bf16.msra.mxu1 %v4061_v61 }
 0x758   :  { %4066 = vmatprep.subr.bf16.mxu1 %v4065_v0 }
 0x75b   :  { %4068 = vmatpush3.bf16.msra.mxu1 %v4065_v0 }
 0x75c   :  { %3618 = vmatprep.subr.mxu1 %v1599_v1 }
 0x75f   :  { %3619 = vmatpush3.msra.mxu1 %v1599_v1 }
 0x760   :  { %3621 = vmatmul.mubr.msk.f32.vlgmr.msra.gmra.mrb[22].mxu1 %vm865_vm6, %v4714_v32  ;;  %4080 = vmatprep.subr.bf16.mxu1 %v4079_v6  ;;  %v1951_v32 = vld [vmem:[%s5082_s1 + $0x4f0] sm:$0xff] }
 0x761   :  { %4082 = vmatpush3.bf16.msra.mxu1 %v4079_v6  ;;  %3660 = vmatprep.mubr.msk.f32.mxu1 %vm865_vm6, %v1851_v42  ;;  %v4116_v34 = vpack.c.bf16 %v1952_v33, %v1951_v32  ;;  %v4148_v32 = vpack.c.bf16 %v2388_v30, %v2387_v29  ;;  %v2389_v33 = vld [vmem:[%s5082_s1 + $0x360] sm:$0xff]  ;;  %v2782_v29 = vld [vmem:[%s5082_s1 + $0x428] sm:$0xff] }
 0x762   :  { %4084 = vmatprep.subr.bf16.mxu1 %v4083_v7 }
 0x763   :  { %4117 = vmatpush3.bf16.msra.mxu0 %v4116_v34 }
 0x764   :  { %4118 = vmatprep.subr.bf16.mxu0 %v4242_v56 }
 0x765   :  { %4086 = vmatpush3.bf16.msra.mxu1 %v4083_v7 }
 0x766   :  { %4088 = vmatprep.subr.bf16.mxu1 %v4087_v10 }
 0x769   :  { %4090 = vmatpush3.bf16.msra.mxu1 %v4087_v10 }
 0x76a   :  { %4092 = vmatprep.subr.bf16.mxu1 %v4091_v13 }
 0x76d   :  { %4094 = vmatpush3.bf16.msra.mxu1 %v4091_v13 }
 0x76e   :  { %4096 = vmatprep.subr.bf16.mxu1 %v4095_v16 }
 0x771   :  { %4098 = vmatpush3.bf16.msra.mxu1 %v4095_v16  ;;  %v3009_v16 = vld [vmem:[%s5082_s1 + $0x528] ss:$0 sm:$0xff] }
 0x772   :  { %4100 = vmatprep.subr.bf16.mxu1 %v4099_v20 }
 0x775   :  { %4102 = vmatpush3.bf16.msra.mxu1 %v4099_v20 }
 0x776   :  { %3658 = vmatprep.subr.mxu1 %v1778_v21 }
 0x779   :  { %3659 = vmatpush3.msra.mxu1 %v1778_v21 }
 0x77a   :  { %3661 = vmatmul.mubr.msk.f32.vlgmr.msra.gmra.mrb[22].mxu1 %vm865_vm6, %v4728_v40  ;;  %4177 = vmatprep.subr.bf16.mxu1 %v4242_v56 }
 0x77b   :  { %3787 = vmatprep.mubr.msk.f32.mxu1 %vm4244_vm5, %v4243_v26 }
 0x84d   :  { %v3662_v35 = vpop.f32.mrb[22].mxu1 }
 0x84e   :  { %v1960_v36 = vsel %vm1959_vm12, %v3662_v35, 0.0  ;;  %v1932_v37 = vpop.f32.mrb[23].mxu1 }
 0x84f   :  { %v1958_v38 = vsel %vm1957_vm13, %v1932_v37, 0.0 }
 0x850   :  { %v1961_v39 = vadd.f32 %v1960_v36, %v1958_v38  ;;  %v2391_v36 = vld [vmem:[%s5082_s1 + $0x370] sm:$0xff] }
 0x852   :  { %v1962_v40 = vrot.slane %v1961_v39, 4 }
 0x854   :  { %v1963_v41 = vadd.f32 %v1962_v40, %v1961_v39  ;;  %v2393_v39 = vld [vmem:[%s5082_s1 + $0x380] sm:$0xff]  ;;  %v2394_v40 = vld [vmem:[%s5082_s1 + $0x388] sm:$0xff] }
 0x856   :  { %v1964_v42 = vrot.slane %v1963_v41, 2 }
 0x858   :  { %v1965_v43 = vadd.f32 %v1964_v42, %v1963_v41  ;;  %v4157_v41 = vpack.c.bf16 %v2394_v40, %v2393_v39  ;;  %v2395_v42 = vld [vmem:[%s5082_s1 + $0x390] sm:$0xff] }
 0x85a   :  { %v1966_v44 = vrot.slane %v1965_v43, 1 }
 0x85c   :  { %v1967_v45 = vadd.f32 %v1966_v44, %v1965_v43  ;;  %v2396_v43 = vld [vmem:[%s5082_s1 + $0x398] sm:$0xff] }
 0x85d   :  { %v4160_v44 = vpack.c.bf16 %v2396_v43, %v2395_v42 }
 0x85e   :  { %3684 = vmatmul.mubr.msk.f32.vlgmr.msra.gmra.mrb[18].mxu0 %vm1957_vm13, %v1967_v45  ;;  %v2617_v45 = vld [vmem:[%s5082_s1 + $0x3a0] sm:$0xff] }
 0x85f   :  { %3690 = vmatprep.mubr.msk.f32.mxu0 %vm4244_vm5, %v4243_v26  ;;  %4120 = vmatpush3.bf16.msra.mxu0 %v4119_v49  ;;  %v4182_v47 = vpack.c.bf16 %v2618_v46, %v2617_v45 }
 0x860   :  { %4121 = vmatprep.subr.bf16.mxu0 %v4242_v56 }
 0x931   :  { %v2037_v50 = vpop.f32.mrb[18].mxu0 }
 0x932   :  { %v2041_v51 = vmul.f32 0.02, %v2037_v50  ;;  %v3685_v52 = vpop.f32.mrb[19].mxu0  ;;  %v2620_v50 = vld [vmem:[%s5082_s1 + $0x3b8] sm:$0xff] }
 0x933   :  { %v2621_v52 = vld [vmem:[%s5082_s1 + $0x3c0] sm:$0xff] }
 0x934   :  { %3691 = vmatmul.mubr.msk.f32.vlgmr.msra.gmra.mrb[20].mxu0 %vm2042_vm14, %v2041_v51 }
 0x935   :  { %4123 = vmatpush3.bf16.msra.mxu0 %v4689_v18  ;;  %3713 = vmatprep.mubr.msk.f32.mxu0 %vm4244_vm5, %v4243_v26 }
 0x936   :  { %4124 = vmatprep.subr.bf16.mxu0 %v4242_v56 }
 0x939   :  { %4126 = vmatpush3.bf16.msra.mxu0 %v4107_v24 }
 0x93a   :  { %4127 = vmatprep.subr.bf16.mxu0 %v4242_v56 }
 0x93d   :  { %4129 = vmatpush3.bf16.msra.mxu0 %v4110_v28  ;;  %v2616_v28 = vld [vmem:[%s5082_s1 + $0xd0] sm:$0x3] }
 0x93e   :  { %4130 = vmatprep.subr.bf16.mxu0 %v4242_v56 }
 0x941   :  { %4132 = vmatpush3.bf16.msra.mxu0 %v4113_v31  ;;  %v2386_v31 = vld [vmem:[%s5082_s1 + $0xc8] sm:$0x3] }
 0x942   :  { %4133 = vmatprep.subr.bf16.mxu0 %v4242_v56 }
 0x945   :  { %4135 = vmatpush3.bf16.msra.mxu0 %v4116_v34  ;;  %v2390_v34 = vld [vmem:[%s5082_s1 + $0x368] sm:$0xff] }
 0x946   :  { %4136 = vmatprep.subr.bf16.mxu0 %v4242_v56 }
 0xa07   :  { %v2112_v53 = vpop.f32.mrb[20].mxu0 }
 0xa08   :  { %v2119_v18 = vrot.slane %v2112_v53, %v4566_v55  ;;  %v3692_v54 = vpop.f32.mrb[21].mxu0  ;;  %v2622_v53 = vld [vmem:[%s5082_s1 + $0x3c8] sm:$0xff] }
 0xa09   :  { %v2623_v54 = vld [vmem:[%s5082_s1 + $0x3d0] sm:$0xff] }
 0xa0a   :  { %v2120_v57 = vsub.f32 %v1932_v37, %v2119_v18  ;;  %v2121_v58 = vsub.f32 %v3662_v35, %v2119_v18  ;;  %v4151_v35 = vpack.c.bf16 %v2390_v34, %v2389_v33  ;;  %v2392_v37 = vld [vmem:[%s5082_s1 + $0x378] sm:$0xff]  ;;  %v4188_v18 = vpack.c.bf16 %v2622_v53, %v2621_v52 }
 0xa0b   :  { %v4154_v38 = vpack.c.bf16 %v2392_v37, %v2391_v36 }
 0xa0c   :  { %v2122_v59 = vmul.f32 %v2120_v57, %v2120_v57  ;;  %v2123_v60 = vmul.f32 %v2121_v58, %v2121_v58 }
 0xa0e   :  { %v2124_v61 = vsel %vm1957_vm13, %v2122_v59, 0.0  ;;  %v2125_v62 = vsel %vm1959_vm12, %v2123_v60, 0.0  ;;  %v2625_v59 = vld [vmem:[%s5082_s1 + $0x3e0] sm:$0xff]  ;;  %v2626_v60 = vld [vmem:[%s5082_s1 + $0x3e8] sm:$0xff] }
 0xa0f   :  { %v2126_v63 = vadd.f32 %v2125_v62, %v2124_v61  ;;  %v4194_v61 = vpack.c.bf16 %v2626_v60, %v2625_v59  ;;  %v2299_v62 = vld [vmem:[%s5082_s1 + $0x300] sm:$0xff] }
 0xa11   :  { %v2127_v0 = vrot.slane %v2126_v63, 4 }
 0xa13   :  { %v2128_v1 = vadd.f32 %v2127_v0, %v2126_v63  ;;  %v2300_v63 = vld [vmem:[%s5082_s1 + $0x308] sm:$0xff] }
 0xa15   :  { %v2129_v2 = vrot.slane %v2128_v1, 2 }
 0xa17   :  { %v2130_v3 = vadd.f32 %v2129_v2, %v2128_v1 }
 0xa19   :  { %v2131_v4 = vrot.slane %v2130_v3, 1 }
 0xa1b   :  { %v2132_v5 = vadd.f32 %v2131_v4, %v2130_v3  ;;  %v4163_v4 = vpack.c.bf16 %v2300_v63, %v2299_v62 }
 0xa1d   :  { %3714 = vmatmul.mubr.msk.f32.vlgmr.msra.gmra.mrb[22].mxu0 %vm1957_vm13, %v2132_v5  ;;  %v2301_v5 = vld [vmem:[%s5082_s1 + $0x310] sm:$0xff] }
 0xa1e   :  { %4138 = vmatpush3.bf16.msra.mxu0 %v4119_v49  ;;  %3720 = vmatprep.mubr.msk.f32.mxu0 %vm4244_vm5, %v4243_v26  ;;  %v2619_v49 = vld [vmem:[%s5082_s1 + $0x3b0] sm:$0xff] }
 0xa1f   :  { %4139 = vmatprep.subr.bf16.mxu0 %v4242_v56  ;;  %v4185_v51 = vpack.c.bf16 %v2620_v50, %v2619_v49 }
 0xaf0   :  { %v2202_v6 = vpop.f32.mrb[22].mxu0 }
 0xaf1   :  { %v2206_v7 = vmul.f32 0.02, %v2202_v6  ;;  %v3715_v8 = vpop.f32.mrb[23].mxu0  ;;  %v2302_v6 = vld [vmem:[%s5082_s1 + $0x318] sm:$0xff] }
 0xaf3   :  { %3721 = vmatmul.mubr.msk.f32.vlgmr.msra.gmra.mrb[24].mxu0 %vm2042_vm14, %v2206_v7 }
 0xaf4   :  { %3727 = vmatprep.mubr.msk.f32.mxu0 %vm4244_vm5, %v4243_v26 }
 0xbc6   :  { %v2276_v9 = vpop.f32.mrb[24].mxu0 }
 0xbc7   :  { %v2277_v10 = vadd.f32 1e-05, %v2276_v9  ;;  %v3722_v11 = vpop.f32.mrb[25].mxu0  ;;  %v4166_v9 = vpack.c.bf16 %v2302_v6, %v2301_v5 }
 0xbc8   :  { %v2304_v11 = vld [vmem:[%s5082_s1 + $0x328] sm:$0xff] }
 0xbc9   :  { %4239 = vrsqrt.f32 %v2277_v10  ;;  %v2303_v10 = vld [vmem:[%s5082_s1 + $0x320] sm:$0xff] }
 0xbd3   :  { %v4240_v13 = vpop.eup %4239 }
 0xbd4   :  { %v2281_v14 = vmul.f32 %v4240_v13, %v1955_v12  ;;  %v4169_v12 = vpack.c.bf16 %v2304_v11, %v2303_v10  ;;  %v2305_v13 = vld [vmem:[%s5082_s1 + $0x330] sm:$0xff] }
 0xbd6   :  { %v2285_v15 = vrot.slane %v2281_v14, %v4566_v55  ;;  %v2298_v55 = vld [vmem:[%s5082_s1 + $0xc0] sm:$0x3]  ;;  %v2306_v14 = vld [vmem:[%s5082_s1 + $0x338] sm:$0xff] }
 0xbd8   :  { %v2286_v17 = vmul.f32 %v2285_v15, %v2120_v57  ;;  %v2287_v19 = vmul.f32 %v2285_v15, %v2121_v58  ;;  %v2624_v57 = vld [vmem:[%s5082_s1 + $0x3d8] sm:$0xff]  ;;  %v4172_v15 = vpack.c.bf16 %v2306_v14, %v2305_v13 }
 0xbd9   :  { %v4191_v58 = vpack.c.bf16 %v2624_v57, %v2623_v54 }
 0xbda   :  { %v2292_v20 = vadd.f32 %v3009_v16, %v2286_v17  ;;  %v2293_v21 = vadd.f32 %v3009_v16, %v2287_v19  ;;  %v2307_v16 = vld [vmem:[%s5082_s1 + $0x340] sm:$0xff]  ;;  %v2308_v17 = vld [vmem:[%s5082_s1 + $0x348] sm:$0xff] }
 0xbdb   :  { %v4175_v19 = vpack.c.bf16 %v2308_v17, %v2307_v16 }
 0xbdc   :  { %v2294_v22 = vmul.f32 0.2, %v2292_v20  ;;  %v2295_v23 = vmul.f32 0.2, %v2293_v21 }
 0xbde   :  { %v2296_v24 = vmax.f32 %v2292_v20, %v2294_v22  ;;  %v2297_v25 = vmax.f32 %v2293_v21, %v2295_v23  ;;  %v2774_v20 = vld [vmem:[%s5082_s1 + $0xd8] sm:$0x3]  ;;  %v2775_v21 = vld [vmem:[%s5082_s1 + $0x3f0] sm:$0xff]  ;;  %v2777_v22 = vld [vmem:[%s5082_s1 + $0x400] sm:$0xff] }
 0xbdf   :  { %v4201_v23 = vpack.c.bf16 %v2776_v48, %v2775_v21 }
 0xbe0   :  { %v4887_v27 = vpack.c.bf16 %v2297_v25, %v2296_v24  ;;  %v2778_v24 = vld [vmem:[%s5082_s1 + $0x408] sm:$0xff] }
 0xbe1   :  { %v4204_v25 = vpack.c.bf16 %v2778_v24, %v2777_v22 }
 0xbe2   :  { %4142 = vmatpush3.bf16.msk.msra.mxu0 %vm4591_vm11, %v4887_v27  ;;  %4180 = vmatpush3.bf16.msk.msra.mxu1 %vm4591_vm11, %v4887_v27 }
 0xbe3   :  { %4143 = vmatprep.subr.bf16.mxu0 %v4242_v56  ;;  %4181 = vmatprep.subr.bf16.mxu1 %v4242_v56 }
 0xbe5   :  { %3728 = vmatmul.mubr.msk.f32.vlgmr.msra.gmra.mrb[26].mxu0 %vm2309_vm15, %v2298_v55  ;;  %3788 = vmatmul.mubr.msk.f32.vlgmr.msra.gmra.mrb[24].mxu1 %vm2309_vm15, %v2616_v28  ;;  %v2781_v28 = vld [vmem:[%s5082_s1 + $0x420] sm:$0xff] }
 0xbe6   :  { %4146 = vmatpush3.bf16.msk.msra.mxu0 %vm4591_vm11, %v4887_v27  ;;  %3734 = vmatprep.mubr.msk.f32.mxu0 %vm4244_vm5, %v4243_v26  ;;  %v4210_v30 = vpack.c.bf16 %v2782_v29, %v2781_v28 }
 0xbe7   :  { %4147 = vmatprep.subr.bf16.mxu0 %v4242_v56  ;;  %3810 = vmatprep.mubr.msk.f32.mxu1 %vm4244_vm5, %v4243_v26 }
 0xbe8   :  { %4183 = vmatpush3.bf16.msra.mxu1 %v4182_v47 }
 0xbe9   :  { %3735 = vmatmul.mubr.msk.f32.vlgmr.msra.gmra.mrb[28].mxu0 %vm2309_vm15, %v2386_v31  ;;  %4184 = vmatprep.subr.bf16.mxu1 %v4242_v56  ;;  %v2783_v31 = vld [vmem:[%s5082_s1 + $0x430] sm:$0xff] }
 0xbea   :  { %4149 = vmatpush3.bf16.msra.mxu0 %v4148_v32  ;;  %3757 = vmatprep.mubr.msk.f32.mxu0 %vm4244_vm5, %v4243_v26  ;;  %v2784_v32 = vld [vmem:[%s5082_s1 + $0x438] sm:$0xff] }
 0xbeb   :  { %4150 = vmatprep.subr.bf16.mxu0 %v4242_v56  ;;  %v4213_v33 = vpack.c.bf16 %v2784_v32, %v2783_v31 }
 0xbec   :  { %4186 = vmatpush3.bf16.msra.mxu1 %v4185_v51 }
 0xbed   :  { %4187 = vmatprep.subr.bf16.mxu1 %v4242_v56 }
 0xbee   :  { %4152 = vmatpush3.bf16.msra.mxu0 %v4151_v35 }
 0xbef   :  { %4153 = vmatprep.subr.bf16.mxu0 %v4242_v56 }
 0xbf0   :  { %4189 = vmatpush3.bf16.msra.mxu1 %v4188_v18 }
 0xbf1   :  { %4190 = vmatprep.subr.bf16.mxu1 %v4242_v56 }
 0xbf2   :  { %4155 = vmatpush3.bf16.msra.mxu0 %v4154_v38 }
 0xbf3   :  { %4156 = vmatprep.subr.bf16.mxu0 %v4242_v56 }
 0xbf4   :  { %4192 = vmatpush3.bf16.msra.mxu1 %v4191_v58 }
 0xbf5   :  { %4193 = vmatprep.subr.bf16.mxu1 %v4242_v56 }
 0xbf6   :  { %4158 = vmatpush3.bf16.msra.mxu0 %v4157_v41 }
 0xbf7   :  { %4159 = vmatprep.subr.bf16.mxu0 %v4242_v56 }
 0xbf8   :  { %4195 = vmatpush3.bf16.msra.mxu1 %v4194_v61 }
 0xbfa   :  { %4161 = vmatpush3.bf16.msra.mxu0 %v4160_v44  ;;  %v3022_v44 = vld [vmem:[%s5082_s1 + $0x530] ss:$0 sm:$0xff] }
 0xbfb   :  { %4162 = vmatprep.subr.bf16.mxu0 %v4242_v56 }
 0xcb8   :  { %v2382_v0 = vpop.f32.mrb[26].mxu0  ;;  %v2696_v1 = vpop.f32.mrb[24].mxu1 }
 0xcb9   :  { %v3729_v2 = vpop.f32.mrb[27].mxu0  ;;  %3811 = vmatmul.mubr.msk.f32.vlgmr.msra.gmra.mrb[26].mxu1 %vm1957_vm13, %v2696_v1  ;;  %v3789_v3 = vpop.f32.mrb[25].mxu1 }
 0xcbc   :  { %v2466_v7 = vpop.f32.mrb[28].mxu0 }
 0xcbd   :  { %v3736_v8 = vpop.f32.mrb[29].mxu0  ;;  %3758 = vmatmul.mubr.msk.f32.vlgmr.msra.gmra.mrb[30].mxu0 %vm1957_vm13, %v2466_v7 }
 0xcbe   :  { %4164 = vmatpush3.bf16.msra.mxu0 %v4163_v4  ;;  %3780 = vmatprep.mubr.msk.f32.mxu0 %vm4244_vm5, %v4243_v26 }
 0xcbf   :  { %4165 = vmatprep.subr.bf16.mxu0 %v4242_v56 }
 0xcc2   :  { %4167 = vmatpush3.bf16.msra.mxu0 %v4166_v9 }
 0xcc3   :  { %4168 = vmatprep.subr.bf16.mxu0 %v4242_v56 }
 0xcc6   :  { %4170 = vmatpush3.bf16.msra.mxu0 %v4169_v12 }
 0xcc7   :  { %4171 = vmatprep.subr.bf16.mxu0 %v4242_v56 }
 0xcca   :  { %4173 = vmatpush3.bf16.msra.mxu0 %v4172_v15 }
 0xccb   :  { %4174 = vmatprep.subr.bf16.mxu0 %v4242_v56 }
 0xcce   :  { %4176 = vmatpush3.bf16.msra.mxu0 %v4175_v19 }
 0xccf   :  { %4196 = vmatprep.subr.bf16.mxu0 %v4242_v56 }
 0xcd1   :  { %3781 = vmatmul.mubr.msk.f32.vlgmr.msra.gmra.mrb[32].mxu0 %vm1957_vm13, %v2382_v0 }
 0xcd2   :  { %4199 = vmatpush3.bf16.msk.msra.mxu0 %vm4591_vm11, %v4887_v27  ;;  %3817 = vmatprep.mubr.msk.f32.mxu0 %vm4244_vm5, %v4243_v26  ;;  %v2780_v27 = vld [vmem:[%s5082_s1 + $0x418] sm:$0xff] }
 0xcd3   :  { %4200 = vmatprep.subr.bf16.mxu0 %v4242_v56 }
 0xcd5   :  { %3818 = vmatmul.mubr.msk.f32.vlgmr.msra.gmra.mrb[34].mxu0 %vm2309_vm15, %v2774_v20 }
 0xcd6   :  { %3840 = vmatprep.mubr.msk.f32.mxu0 %vm4244_vm5, %v4243_v26  ;;  %4202 = vmatpush3.bf16.msra.mxu0 %v4201_v23  ;;  %v2779_v26 = vld [vmem:[%s5082_s1 + $0x410] sm:$0xff] }
 0xcd7   :  { %4203 = vmatprep.subr.bf16.mxu0 %v4242_v56  ;;  %v4207_v55 = vpack.c.bf16 %v2780_v27, %v2779_v26 }
 0xcda   :  { %4205 = vmatpush3.bf16.msra.mxu0 %v4204_v25 }
 0xcdb   :  { %4206 = vmatprep.subr.bf16.mxu0 %v4242_v56 }
 0xcde   :  { %4208 = vmatpush3.bf16.msra.mxu0 %v4207_v55 }
 0xcdf   :  { %4209 = vmatprep.subr.bf16.mxu0 %v4242_v56 }
 0xce2   :  { %4211 = vmatpush3.bf16.msra.mxu0 %v4210_v30 }
 0xce3   :  { %4212 = vmatprep.subr.bf16.mxu0 %v4242_v56 }
 0xce6   :  { %4214 = vmatpush3.bf16.msra.mxu0 %v4213_v33 }
 0xd8c   :  { %v2769_v34 = vpop.f32.mrb[26].mxu1 }
 0xd8d   :  { %v3812_v35 = vpop.f32.mrb[27].mxu1 }
 0xd90   :  { %v2539_v36 = vpop.f32.mrb[30].mxu0 }
 0xd91   :  { %v3759_v37 = vpop.f32.mrb[31].mxu0 }
 0xda4   :  { %v2612_v38 = vpop.f32.mrb[32].mxu0 }
 0xda5   :  { %v2613_v39 = vadd.f32 %v2612_v38, %v2539_v36  ;;  %v3782_v40 = vpop.f32.mrb[33].mxu0 }
 0xda7   :  { %v2773_v41 = vadd.f32 %v2769_v34, %v2613_v39 }
 0xda8   :  { %v2854_v42 = vpop.f32.mrb[34].mxu0 }
 0xda9   :  { %v3819_v56 = vpop.f32.mrb[35].mxu0  ;;  %3841 = vmatmul.mubr.msk.f32.vlgmr.msra.gmra.mrb[36].mxu0 %vm1957_vm13, %v2854_v42 }
 0xe7c   :  { %v2927_v43 = vpop.f32.mrb[36].mxu0 }
 0xe7d   :  { %v2931_v45 = vadd.f32 %v2927_v43, %v2773_v41  ;;  %v3842_v46 = vpop.f32.mrb[37].mxu0 }
 0xe7f   :  { %v2937_v47 = vadd.f32 %v3022_v44, %v2931_v45 }
 0xe81   :  { %2939 = vst.msk [vmem:[%s5083_s2] sm:$0x3] %vm2938_vm0, %v2937_v47 }

</bundles_post_ra>
